<compile_context>
chip_gen: v7x
topology: tpu7x:2x2x1
jax: 0.10.0
libtpu: 0.0.40
codegen_flags: <defaults>
</compile_context>

<pallas_src>
import functools
import math

import jax
import jax.numpy as jnp
from jax.experimental import pallas as pl
from jax.experimental.pallas import tpu as pltpu  # noqa: F401  (kept per template)


# ----------------------------------------------------------------------------
# Config
# ----------------------------------------------------------------------------

class Config:
    vocab_size = 100
    hidden = 32
    num_heads = 4
    head_dim = 8            # hidden // num_heads
    intermediate = 64
    num_layers = 2
    max_position = 16
    type_vocab = 2
    layer_norm_eps = 1e-12


# ----------------------------------------------------------------------------
# Fused BERT-for-NSP kernel (one pallas_call, no grid: everything resident)
# ----------------------------------------------------------------------------

def _layer_norm(v, g, b, eps):
    mean = jnp.mean(v, axis=-1, keepdims=True)
    var = jnp.mean(jnp.square(v - mean), axis=-1, keepdims=True)
    return (v - mean) * jax.lax.rsqrt(var + eps) * g + b


def _gelu(v):
    # exact (erf-based) GELU, matching HF BERT's default "gelu"
    return 0.5 * v * (1.0 + jax.lax.erf(v * (1.0 / math.sqrt(2.0))))


def _bert_kernel(
    # activations / mask (f32)
    emb_ref, mask_ref, emb_ln_ref,
    # per-layer weight slabs (leading dim = layer); matmul slabs are bf16
    qkv_w_ref, qkv_b_ref, wo_ref, w1_ref, b1_ref, w2_ref, vecs_ref,
    # pooler / NSP head
    pool_w_ref, pool_b_ref, nsp_w_ref, nsp_b_ref,
    # output
    logits_ref,
    *, B, S, nh, dh, L, eps):

    H = nh * dh
    BS = B * S

    # ---- embeddings LayerNorm -------------------------------------------
    eln = emb_ln_ref[...]                              # (2, H): [gamma; beta]
    x = _layer_norm(emb_ref[...], eln[0:1, :], eln[1:2, :], eps)   # (BS, H) f32

    mask = mask_ref[...]                               # (BS, BS) block-diag additive mask

    # ---- encoder layers: static unroll, weights resident in VMEM ---------
    for l in range(L):
        qkv_w = qkv_w_ref[l]                           # (H, 3H) bf16
        qkv_b = qkv_b_ref[l]                           # (1, 3H) f32
        wo = wo_ref[l]                                 # (H, H)  bf16
        vecs = vecs_ref[l]                             # (6, H)  f32
        bo, ln1_g, ln1_b = vecs[0:1, :], vecs[1:2, :], vecs[2:3, :]
        b2, ln2_g, ln2_b = vecs[3:4, :], vecs[4:5, :], vecs[5:6, :]

        # --- self-attention: one fused QKV projection over the packed batch
        xb = x.astype(jnp.bfloat16)
        qkv = jnp.dot(xb, qkv_w, preferred_element_type=jnp.float32) + qkv_b  # (BS, 3H)

        ctx_heads = []
        for h in range(nh):                            # nh=4 static unroll
            q = qkv[:, h * dh:(h + 1) * dh].astype(jnp.bfloat16)          # scale pre-folded
            k = qkv[:, H + h * dh:H + (h + 1) * dh].astype(jnp.bfloat16)
            v = qkv[:, 2 * H + h * dh:2 * H + (h + 1) * dh].astype(jnp.bfloat16)
            # scores = q @ k^T  (contract last dims; no explicit transpose)
            s = jax.lax.dot_general(q, k, (((1,), (1,)), ((), ())),
                                    preferred_element_type=jnp.float32)
            s = s + mask
            s = s - jnp.max(s, axis=-1, keepdims=True)
            p = jnp.exp(s)
            p = p * pl.reciprocal(jnp.sum(p, axis=-1, keepdims=True), approx=True)
            ctx_heads.append(jnp.dot(p.astype(jnp.bfloat16), v,
                                     preferred_element_type=jnp.float32))   # (BS, dh)
        ctx = jnp.concatenate(ctx_heads, axis=-1)                           # (BS, H) lane-packed
        attn_out = jnp.dot(ctx.astype(jnp.bfloat16), wo,
                           preferred_element_type=jnp.float32) + bo
        x = _layer_norm(x + attn_out, ln1_g, ln1_b, eps)

        # --- FFN
        h1 = jnp.dot(x.astype(jnp.bfloat16), w1_ref[l],
                     preferred_element_type=jnp.float32) + b1_ref[l]
        h1 = _gelu(h1)
        ffn = jnp.dot(h1.astype(jnp.bfloat16), w2_ref[l],
                      preferred_element_type=jnp.float32) + b2
        x = _layer_norm(x + ffn, ln2_g, ln2_b, eps)

    # ---- pooler + NSP head, batch-vectorized ------------------------------
    # Gather the B [CLS] rows (rows 0, S, 2S, ...) with a tiny one-hot matmul
    # (single aligned gather-matmul instead of B degenerate (1,H) matmuls and
    # B masked row stores).
    pos = jax.lax.broadcasted_iota(jnp.int32, (B, BS), 1)
    tgt = jax.lax.broadcasted_iota(jnp.int32, (B, BS), 0) * S
    sel = (pos == tgt).astype(jnp.bfloat16)                          # (B, BS)
    cls = jnp.dot(sel, x.astype(jnp.bfloat16),
                  preferred_element_type=jnp.float32)                # (B, H)
    pooled = jnp.tanh(jnp.dot(cls.astype(jnp.bfloat16), pool_w_ref[...],
                              preferred_element_type=jnp.float32) + pool_b_ref[...])
    logits_ref[...] = (jnp.dot(pooled.astype(jnp.bfloat16), nsp_w_ref[...],
                               preferred_element_type=jnp.float32) + nsp_b_ref[...])


# ----------------------------------------------------------------------------
# Synthetic parameters, laid out as lane-dense packed slabs for the kernel.
# ----------------------------------------------------------------------------

def init_params(key, cfg):
    std = 0.02
    H, I, L = cfg.hidden, cfg.intermediate, cfg.num_layers
    nh, dh = cfg.num_heads, cfg.head_dim
    keys = iter(jax.random.split(key, 12))

    def nrm(shape):
        return (std * jax.random.normal(next(keys), shape)).astype(jnp.float32)

    p = {}
    p["word_emb"] = nrm((cfg.vocab_size, H))
    p["pos_emb"] = nrm((cfg.max_position, H))
    p["type_emb"] = nrm((cfg.type_vocab, H))
    p["emb_ln"] = jnp.concatenate(
        [jnp.ones((1, H), jnp.float32), jnp.zeros((1, H), jnp.float32)], axis=0)  # [gamma; beta]

    att_scale = 1.0 / math.sqrt(dh)
    # Fused QKV slab (L, H, 3H); 1/sqrt(dh) folded into BOTH Wq and bq.
    wq = nrm((L, H, H)) * att_scale
    wk = nrm((L, H, H))
    wv = nrm((L, H, H))
    bq = jnp.zeros((L, 1, H), jnp.float32) * att_scale   # zeros here, scaled for generality
    bk = jnp.zeros((L, 1, H), jnp.float32)
    bv = jnp.zeros((L, 1, H), jnp.float32)
    p["qkv_w"] = jnp.concatenate([wq, wk, wv], axis=-1).astype(jnp.bfloat16)   # (L, H, 3H)
    p["qkv_b"] = jnp.concatenate([bq, bk, bv], axis=-1)                        # (L, 1, 3H) f32

    p["wo"] = nrm((L, H, H)).astype(jnp.bfloat16)                              # (L, H, H)

    # One slab for all per-layer bias / LayerNorm vectors: rows =
    # [bo, ln1_g, ln1_b, b2, ln2_g, ln2_b]  -> (L, 6, H) f32, lane-dense.
    bo = jnp.zeros((L, 1, H), jnp.float32)
    ln1_g = jnp.ones((L, 1, H), jnp.float32)
    ln1_b = jnp.zeros((L, 1, H), jnp.float32)
    b2 = jnp.zeros((L, 1, H), jnp.float32)
    ln2_g = jnp.ones((L, 1, H), jnp.float32)
    ln2_b = jnp.zeros((L, 1, H), jnp.float32)
    p["vecs"] = jnp.concatenate([bo, ln1_g, ln1_b, b2, ln2_g, ln2_b], axis=1)

    p["w1"] = nrm((L, H, I)).astype(jnp.bfloat16)
    p["b1"] = jnp.zeros((L, 1, I), jnp.float32)
    p["w2"] = nrm((L, I, H)).astype(jnp.bfloat16)

    p["pool_w"] = nrm((H, H)).astype(jnp.bfloat16)
    p["pool_b"] = jnp.zeros((1, H), jnp.float32)
    p["nsp_w"] = nrm((H, 2)).astype(jnp.bfloat16)
    p["nsp_b"] = jnp.zeros((1, 2), jnp.float32)
    return p


# ----------------------------------------------------------------------------
# Forward pass: embedding gathers in XLA (glue), everything else in one kernel.
# ----------------------------------------------------------------------------

def bert_nsp_forward(params, input_ids, token_type_ids, attention_mask, cfg):
    B, S = input_ids.shape
    H, nh, dh, L = cfg.hidden, cfg.num_heads, cfg.head_dim, cfg.num_layers
    BS = B * S

    # --- embeddings --------------------------------------------------------
    # TODO(synk): embedding table gathers stay in XLA; everything after is one kernel.
    emb = (params["word_emb"][input_ids]
           + params["pos_emb"][:S][None, :, :]
           + params["type_emb"][token_type_ids]).reshape(BS, H).astype(jnp.float32)

    # Block-diagonal additive mask over the packed (B*S, B*S) score matrix:
    # within-batch keys get the HF-style (1-mask)*-1e4 penalty; cross-batch keys
    # get -1e4 (their softmax weight underflows to exactly 0 in f32), so one
    # fused attention over all B*S rows matches independent per-batch attention.
    add_mask = (1.0 - attention_mask.astype(jnp.float32)) * -10000.0          # (B, S)
    same_b = jnp.arange(B)[:, None] == jnp.arange(B)[None, :]                  # (B, B)
    m3 = jnp.where(same_b[:, :, None], add_mask[None, :, :], -10000.0)         # (Bq, Bk, Sk)
    mask = jnp.broadcast_to(m3[:, None, :, :], (B, S, B, S)).reshape(BS, BS)

    kernel = functools.partial(_bert_kernel, B=B, S=S, nh=nh, dh=dh, L=L,
                               eps=cfg.layer_norm_eps)

    # No grid: whole arrays map to VMEM-resident blocks (total well under 1 MiB),
    # the kernel runs once, and the layer loop is unrolled inside it.
    logits = pl.pallas_call(
        kernel,
        out_shape=jax.ShapeDtypeStruct((B, 2), jnp.float32),
    )(emb, mask, params["emb_ln"],
      params["qkv_w"], params["qkv_b"], params["wo"],
      params["w1"], params["b1"], params["w2"], params["vecs"],
      params["pool_w"], params["pool_b"], params["nsp_w"], params["nsp_b"])
    return logits


if __name__ == "__main__":
    cfg = Config()
    B, S = 2, 8

    key = jax.random.PRNGKey(0)
    k_param, k_ids = jax.random.split(key, 2)

    params = init_params(k_param, cfg)

    input_ids = jax.random.randint(k_ids, (B, S), 0, cfg.vocab_size, dtype=jnp.int32)
    token_type_ids = jnp.concatenate(
        [jnp.zeros((B, S // 2), jnp.int32), jnp.ones((B, S - S // 2), jnp.int32)],
        axis=1)
    attention_mask = jnp.ones((B, S), jnp.int32).at[1, -2:].set(0)  # pad 2 tokens in row 1

    fwd = jax.jit(functools.partial(bert_nsp_forward, cfg=cfg))
    logits = fwd(params, input_ids, token_type_ids, attention_mask)
    jax.block_until_ready(logits)

    assert logits.shape == (B, 2), logits.shape
    assert logits.dtype == jnp.float32
    print("KERNEL_OK")
</pallas_src>

<mosaic_0001>
module attributes {stable_mosaic.version = 11 : i64} {
  func.func @_bert_kernel(%arg0: memref<16x32xf32, #tpu.memory_space<vmem>>, %arg1: memref<16x16xf32, #tpu.memory_space<vmem>>, %arg2: memref<2x32xf32, #tpu.memory_space<vmem>>, %arg3: memref<2x32x96xbf16, #tpu.memory_space<vmem>>, %arg4: memref<2x1x96xf32, #tpu.memory_space<vmem>>, %arg5: memref<2x32x32xbf16, #tpu.memory_space<vmem>>, %arg6: memref<2x32x64xbf16, #tpu.memory_space<vmem>>, %arg7: memref<2x1x64xf32, #tpu.memory_space<vmem>>, %arg8: memref<2x64x32xbf16, #tpu.memory_space<vmem>>, %arg9: memref<2x6x32xf32, #tpu.memory_space<vmem>>, %arg10: memref<32x32xbf16, #tpu.memory_space<vmem>>, %arg11: memref<1x32xf32, #tpu.memory_space<vmem>>, %arg12: memref<32x2xbf16, #tpu.memory_space<vmem>>, %arg13: memref<1x2xf32, #tpu.memory_space<vmem>>, %arg14: memref<2x2xf32, #tpu.memory_space<vmem>>) attributes {dimension_semantics = [], scalar_prefetch = 0 : i64, scratch_operands = 0 : i64, tpu.core_type = #tpu.core_type<tc>} {
    %c0 = arith.constant 0 : index
    %c0_0 = arith.constant 0 : index
    %0 = vector.load %arg2[%c0, %c0_0] : memref<2x32xf32, #tpu.memory_space<vmem>>, vector<2x32xf32>
    %c0_1 = arith.constant 0 : index
    %c0_2 = arith.constant 0 : index
    %1 = vector.load %arg0[%c0_1, %c0_2] : memref<16x32xf32, #tpu.memory_space<vmem>>, vector<16x32xf32>
    %2 = vector.extract_strided_slice %0 {offsets = [0, 0], sizes = [1, 32], strides = [1, 1]} : vector<2x32xf32> to vector<1x32xf32>
    %3 = vector.extract_strided_slice %0 {offsets = [1, 0], sizes = [1, 32], strides = [1, 1]} : vector<2x32xf32> to vector<1x32xf32>
    %cst = arith.constant dense<0.000000e+00> : vector<16xf32>
    %4 = vector.multi_reduction <add>, %1, %cst [1] : vector<16x32xf32> to vector<16xf32>
    %5 = vector.shape_cast %4 : vector<16xf32> to vector<16x1xf32>
    %cst_3 = arith.constant 3.200000e+01 : f32
    %6 = vector.broadcast %cst_3 : f32 to vector<16x1xf32>
    %7 = arith.divf %5, %6 : vector<16x1xf32>
    %8 = vector.broadcast %7 : vector<16x1xf32> to vector<16x32xf32>
    %9 = arith.subf %1, %8 : vector<16x32xf32>
    %10 = arith.mulf %9, %9 : vector<16x32xf32>
    %cst_4 = arith.constant dense<0.000000e+00> : vector<16xf32>
    %11 = vector.multi_reduction <add>, %10, %cst_4 [1] : vector<16x32xf32> to vector<16xf32>
    %12 = vector.shape_cast %11 : vector<16xf32> to vector<16x1xf32>
    %cst_5 = arith.constant 3.200000e+01 : f32
    %13 = vector.broadcast %cst_5 : f32 to vector<16x1xf32>
    %14 = arith.divf %12, %13 : vector<16x1xf32>
    %15 = vector.broadcast %7 : vector<16x1xf32> to vector<16x32xf32>
    %16 = arith.subf %1, %15 : vector<16x32xf32>
    %cst_6 = arith.constant 9.99999996E-13 : f32
    %17 = vector.broadcast %cst_6 : f32 to vector<16x1xf32>
    %18 = arith.addf %14, %17 : vector<16x1xf32>
    %19 = math.rsqrt %18 : vector<16x1xf32>
    %20 = vector.broadcast %19 : vector<16x1xf32> to vector<16x32xf32>
    %21 = arith.mulf %16, %20 : vector<16x32xf32>
    %22 = vector.broadcast %2 : vector<1x32xf32> to vector<16x32xf32>
    %23 = arith.mulf %21, %22 : vector<16x32xf32>
    %24 = vector.broadcast %3 : vector<1x32xf32> to vector<16x32xf32>
    %25 = arith.addf %23, %24 : vector<16x32xf32>
    %c0_7 = arith.constant 0 : index
    %c0_8 = arith.constant 0 : index
    %26 = vector.load %arg1[%c0_7, %c0_8] : memref<16x16xf32, #tpu.memory_space<vmem>>, vector<16x16xf32>
    %c0_9 = arith.constant 0 : index
    %c0_10 = arith.constant 0 : index
    %c0_11 = arith.constant 0 : index
    %27 = vector.load %arg3[%c0_9, %c0_10, %c0_11] : memref<2x32x96xbf16, #tpu.memory_space<vmem>>, vector<1x32x96xbf16>
    %28 = vector.shape_cast %27 : vector<1x32x96xbf16> to vector<32x96xbf16>
    %c0_12 = arith.constant 0 : index
    %c0_13 = arith.constant 0 : index
    %c0_14 = arith.constant 0 : index
    %29 = vector.load %arg4[%c0_12, %c0_13, %c0_14] : memref<2x1x96xf32, #tpu.memory_space<vmem>>, vector<1x1x96xf32>
    %30 = vector.shape_cast %29 : vector<1x1x96xf32> to vector<1x96xf32>
    %c0_15 = arith.constant 0 : index
    %c0_16 = arith.constant 0 : index
    %c0_17 = arith.constant 0 : index
    %31 = vector.load %arg5[%c0_15, %c0_16, %c0_17] : memref<2x32x32xbf16, #tpu.memory_space<vmem>>, vector<1x32x32xbf16>
    %32 = vector.shape_cast %31 : vector<1x32x32xbf16> to vector<32x32xbf16>
    %c0_18 = arith.constant 0 : index
    %c0_19 = arith.constant 0 : index
    %c0_20 = arith.constant 0 : index
    %33 = vector.load %arg9[%c0_18, %c0_19, %c0_20] : memref<2x6x32xf32, #tpu.memory_space<vmem>>, vector<1x6x32xf32>
    %34 = vector.shape_cast %33 : vector<1x6x32xf32> to vector<6x32xf32>
    %35 = vector.extract_strided_slice %34 {offsets = [0, 0], sizes = [1, 32], strides = [1, 1]} : vector<6x32xf32> to vector<1x32xf32>
    %36 = vector.extract_strided_slice %34 {offsets = [1, 0], sizes = [1, 32], strides = [1, 1]} : vector<6x32xf32> to vector<1x32xf32>
    %37 = vector.extract_strided_slice %34 {offsets = [2, 0], sizes = [1, 32], strides = [1, 1]} : vector<6x32xf32> to vector<1x32xf32>
    %38 = vector.extract_strided_slice %34 {offsets = [3, 0], sizes = [1, 32], strides = [1, 1]} : vector<6x32xf32> to vector<1x32xf32>
    %39 = vector.extract_strided_slice %34 {offsets = [4, 0], sizes = [1, 32], strides = [1, 1]} : vector<6x32xf32> to vector<1x32xf32>
    %40 = vector.extract_strided_slice %34 {offsets = [5, 0], sizes = [1, 32], strides = [1, 1]} : vector<6x32xf32> to vector<1x32xf32>
    %41 = arith.truncf %25 : vector<16x32xf32> to vector<16x32xbf16>
    %cst_21 = arith.constant dense<0.000000e+00> : vector<16x96xf32>
    %42 = tpu.matmul %41, %28, %cst_21 {dimension_numbers = #tpu.dot_dimension_numbers<[1], [0], [0], [1], [0, 0, 1, 1], [], []>} : vector<16x32xbf16>, vector<32x96xbf16>, vector<16x96xf32> -> vector<16x96xf32>
    %43 = vector.broadcast %30 : vector<1x96xf32> to vector<16x96xf32>
    %44 = arith.addf %42, %43 : vector<16x96xf32>
    %45 = vector.extract_strided_slice %44 {offsets = [0, 0], sizes = [16, 8], strides = [1, 1]} : vector<16x96xf32> to vector<16x8xf32>
    %46 = arith.truncf %45 : vector<16x8xf32> to vector<16x8xbf16>
    %47 = vector.extract_strided_slice %44 {offsets = [0, 32], sizes = [16, 8], strides = [1, 1]} : vector<16x96xf32> to vector<16x8xf32>
    %48 = arith.truncf %47 : vector<16x8xf32> to vector<16x8xbf16>
    %49 = vector.extract_strided_slice %44 {offsets = [0, 64], sizes = [16, 8], strides = [1, 1]} : vector<16x96xf32> to vector<16x8xf32>
    %50 = arith.truncf %49 : vector<16x8xf32> to vector<16x8xbf16>
    %cst_22 = arith.constant dense<0.000000e+00> : vector<16x16xf32>
    %51 = tpu.matmul %46, %48, %cst_22 {dimension_numbers = #tpu.dot_dimension_numbers<[1], [1], [0], [0], [0, 0, 1, 0], [], []>} : vector<16x8xbf16>, vector<16x8xbf16>, vector<16x16xf32> -> vector<16x16xf32>
    %52 = arith.addf %51, %26 : vector<16x16xf32>
    %cst_23 = arith.constant dense<0xFF800000> : vector<16xf32>
    %53 = vector.multi_reduction <maximumf>, %52, %cst_23 [1] : vector<16x16xf32> to vector<16xf32>
    %54 = vector.shape_cast %53 : vector<16xf32> to vector<16x1xf32>
    %55 = vector.broadcast %54 : vector<16x1xf32> to vector<16x16xf32>
    %56 = arith.subf %52, %55 : vector<16x16xf32>
    %57 = math.exp %56 : vector<16x16xf32>
    %cst_24 = arith.constant dense<0.000000e+00> : vector<16xf32>
    %58 = vector.multi_reduction <add>, %57, %cst_24 [1] : vector<16x16xf32> to vector<16xf32>
    %59 = vector.shape_cast %58 : vector<16xf32> to vector<16x1xf32>
    %60 = tpu.reciprocal %59 {approx = true} : vector<16x1xf32> -> vector<16x1xf32>
    %61 = vector.broadcast %60 : vector<16x1xf32> to vector<16x16xf32>
    %62 = arith.mulf %57, %61 : vector<16x16xf32>
    %63 = arith.truncf %62 : vector<16x16xf32> to vector<16x16xbf16>
    %cst_25 = arith.constant dense<0.000000e+00> : vector<16x8xf32>
    %64 = tpu.matmul %63, %50, %cst_25 {dimension_numbers = #tpu.dot_dimension_numbers<[1], [0], [0], [1], [0, 0, 1, 1], [], []>} : vector<16x16xbf16>, vector<16x8xbf16>, vector<16x8xf32> -> vector<16x8xf32>
    %65 = vector.extract_strided_slice %44 {offsets = [0, 8], sizes = [16, 8], strides = [1, 1]} : vector<16x96xf32> to vector<16x8xf32>
    %66 = arith.truncf %65 : vector<16x8xf32> to vector<16x8xbf16>
    %67 = vector.extract_strided_slice %44 {offsets = [0, 40], sizes = [16, 8], strides = [1, 1]} : vector<16x96xf32> to vector<16x8xf32>
    %68 = arith.truncf %67 : vector<16x8xf32> to vector<16x8xbf16>
    %69 = vector.extract_strided_slice %44 {offsets = [0, 72], sizes = [16, 8], strides = [1, 1]} : vector<16x96xf32> to vector<16x8xf32>
    %70 = arith.truncf %69 : vector<16x8xf32> to vector<16x8xbf16>
    %cst_26 = arith.constant dense<0.000000e+00> : vector<16x16xf32>
    %71 = tpu.matmul %66, %68, %cst_26 {dimension_numbers = #tpu.dot_dimension_numbers<[1], [1], [0], [0], [0, 0, 1, 0], [], []>} : vector<16x8xbf16>, vector<16x8xbf16>, vector<16x16xf32> -> vector<16x16xf32>
    %72 = arith.addf %71, %26 : vector<16x16xf32>
    %cst_27 = arith.constant dense<0xFF800000> : vector<16xf32>
    %73 = vector.multi_reduction <maximumf>, %72, %cst_27 [1] : vector<16x16xf32> to vector<16xf32>
    %74 = vector.shape_cast %73 : vector<16xf32> to vector<16x1xf32>
    %75 = vector.broadcast %74 : vector<16x1xf32> to vector<16x16xf32>
    %76 = arith.subf %72, %75 : vector<16x16xf32>
    %77 = math.exp %76 : vector<16x16xf32>
    %cst_28 = arith.constant dense<0.000000e+00> : vector<16xf32>
    %78 = vector.multi_reduction <add>, %77, %cst_28 [1] : vector<16x16xf32> to vector<16xf32>
    %79 = vector.shape_cast %78 : vector<16xf32> to vector<16x1xf32>
    %80 = tpu.reciprocal %79 {approx = true} : vector<16x1xf32> -> vector<16x1xf32>
    %81 = vector.broadcast %80 : vector<16x1xf32> to vector<16x16xf32>
    %82 = arith.mulf %77, %81 : vector<16x16xf32>
    %83 = arith.truncf %82 : vector<16x16xf32> to vector<16x16xbf16>
    %cst_29 = arith.constant dense<0.000000e+00> : vector<16x8xf32>
    %84 = tpu.matmul %83, %70, %cst_29 {dimension_numbers = #tpu.dot_dimension_numbers<[1], [0], [0], [1], [0, 0, 1, 1], [], []>} : vector<16x16xbf16>, vector<16x8xbf16>, vector<16x8xf32> -> vector<16x8xf32>
    %85 = vector.extract_strided_slice %44 {offsets = [0, 16], sizes = [16, 8], strides = [1, 1]} : vector<16x96xf32> to vector<16x8xf32>
    %86 = arith.truncf %85 : vector<16x8xf32> to vector<16x8xbf16>
    %87 = vector.extract_strided_slice %44 {offsets = [0, 48], sizes = [16, 8], strides = [1, 1]} : vector<16x96xf32> to vector<16x8xf32>
    %88 = arith.truncf %87 : vector<16x8xf32> to vector<16x8xbf16>
    %89 = vector.extract_strided_slice %44 {offsets = [0, 80], sizes = [16, 8], strides = [1, 1]} : vector<16x96xf32> to vector<16x8xf32>
    %90 = arith.truncf %89 : vector<16x8xf32> to vector<16x8xbf16>
    %cst_30 = arith.constant dense<0.000000e+00> : vector<16x16xf32>
    %91 = tpu.matmul %86, %88, %cst_30 {dimension_numbers = #tpu.dot_dimension_numbers<[1], [1], [0], [0], [0, 0, 1, 0], [], []>} : vector<16x8xbf16>, vector<16x8xbf16>, vector<16x16xf32> -> vector<16x16xf32>
    %92 = arith.addf %91, %26 : vector<16x16xf32>
    %cst_31 = arith.constant dense<0xFF800000> : vector<16xf32>
    %93 = vector.multi_reduction <maximumf>, %92, %cst_31 [1] : vector<16x16xf32> to vector<16xf32>
    %94 = vector.shape_cast %93 : vector<16xf32> to vector<16x1xf32>
    %95 = vector.broadcast %94 : vector<16x1xf32> to vector<16x16xf32>
    %96 = arith.subf %92, %95 : vector<16x16xf32>
    %97 = math.exp %96 : vector<16x16xf32>
    %cst_32 = arith.constant dense<0.000000e+00> : vector<16xf32>
    %98 = vector.multi_reduction <add>, %97, %cst_32 [1] : vector<16x16xf32> to vector<16xf32>
    %99 = vector.shape_cast %98 : vector<16xf32> to vector<16x1xf32>
    %100 = tpu.reciprocal %99 {approx = true} : vector<16x1xf32> -> vector<16x1xf32>
    %101 = vector.broadcast %100 : vector<16x1xf32> to vector<16x16xf32>
    %102 = arith.mulf %97, %101 : vector<16x16xf32>
    %103 = arith.truncf %102 : vector<16x16xf32> to vector<16x16xbf16>
    %cst_33 = arith.constant dense<0.000000e+00> : vector<16x8xf32>
    %104 = tpu.matmul %103, %90, %cst_33 {dimension_numbers = #tpu.dot_dimension_numbers<[1], [0], [0], [1], [0, 0, 1, 1], [], []>} : vector<16x16xbf16>, vector<16x8xbf16>, vector<16x8xf32> -> vector<16x8xf32>
    %105 = vector.extract_strided_slice %44 {offsets = [0, 24], sizes = [16, 8], strides = [1, 1]} : vector<16x96xf32> to vector<16x8xf32>
    %106 = arith.truncf %105 : vector<16x8xf32> to vector<16x8xbf16>
    %107 = vector.extract_strided_slice %44 {offsets = [0, 56], sizes = [16, 8], strides = [1, 1]} : vector<16x96xf32> to vector<16x8xf32>
    %108 = arith.truncf %107 : vector<16x8xf32> to vector<16x8xbf16>
    %109 = vector.extract_strided_slice %44 {offsets = [0, 88], sizes = [16, 8], strides = [1, 1]} : vector<16x96xf32> to vector<16x8xf32>
    %110 = arith.truncf %109 : vector<16x8xf32> to vector<16x8xbf16>
    %cst_34 = arith.constant dense<0.000000e+00> : vector<16x16xf32>
    %111 = tpu.matmul %106, %108, %cst_34 {dimension_numbers = #tpu.dot_dimension_numbers<[1], [1], [0], [0], [0, 0, 1, 0], [], []>} : vector<16x8xbf16>, vector<16x8xbf16>, vector<16x16xf32> -> vector<16x16xf32>
    %112 = arith.addf %111, %26 : vector<16x16xf32>
    %cst_35 = arith.constant dense<0xFF800000> : vector<16xf32>
    %113 = vector.multi_reduction <maximumf>, %112, %cst_35 [1] : vector<16x16xf32> to vector<16xf32>
    %114 = vector.shape_cast %113 : vector<16xf32> to vector<16x1xf32>
    %115 = vector.broadcast %114 : vector<16x1xf32> to vector<16x16xf32>
    %116 = arith.subf %112, %115 : vector<16x16xf32>
    %117 = math.exp %116 : vector<16x16xf32>
    %cst_36 = arith.constant dense<0.000000e+00> : vector<16xf32>
    %118 = vector.multi_reduction <add>, %117, %cst_36 [1] : vector<16x16xf32> to vector<16xf32>
    %119 = vector.shape_cast %118 : vector<16xf32> to vector<16x1xf32>
    %120 = tpu.reciprocal %119 {approx = true} : vector<16x1xf32> -> vector<16x1xf32>
    %121 = vector.broadcast %120 : vector<16x1xf32> to vector<16x16xf32>
    %122 = arith.mulf %117, %121 : vector<16x16xf32>
    %123 = arith.truncf %122 : vector<16x16xf32> to vector<16x16xbf16>
    %cst_37 = arith.constant dense<0.000000e+00> : vector<16x8xf32>
    %124 = tpu.matmul %123, %110, %cst_37 {dimension_numbers = #tpu.dot_dimension_numbers<[1], [0], [0], [1], [0, 0, 1, 1], [], []>} : vector<16x16xbf16>, vector<16x8xbf16>, vector<16x8xf32> -> vector<16x8xf32>
    %125 = tpu.concatenate %64, %84, %104, %124 in 1 : vector<16x8xf32>, vector<16x8xf32>, vector<16x8xf32>, vector<16x8xf32> -> vector<16x32xf32>
    %126 = arith.truncf %125 : vector<16x32xf32> to vector<16x32xbf16>
    %cst_38 = arith.constant dense<0.000000e+00> : vector<16x32xf32>
    %127 = tpu.matmul %126, %32, %cst_38 {dimension_numbers = #tpu.dot_dimension_numbers<[1], [0], [0], [1], [0, 0, 1, 1], [], []>} : vector<16x32xbf16>, vector<32x32xbf16>, vector<16x32xf32> -> vector<16x32xf32>
    %128 = vector.broadcast %35 : vector<1x32xf32> to vector<16x32xf32>
    %129 = arith.addf %127, %128 : vector<16x32xf32>
    %130 = arith.addf %25, %129 : vector<16x32xf32>
    %cst_39 = arith.constant dense<0.000000e+00> : vector<16xf32>
    %131 = vector.multi_reduction <add>, %130, %cst_39 [1] : vector<16x32xf32> to vector<16xf32>
    %132 = vector.shape_cast %131 : vector<16xf32> to vector<16x1xf32>
    %cst_40 = arith.constant 3.200000e+01 : f32
    %133 = vector.broadcast %cst_40 : f32 to vector<16x1xf32>
    %134 = arith.divf %132, %133 : vector<16x1xf32>
    %135 = vector.broadcast %134 : vector<16x1xf32> to vector<16x32xf32>
    %136 = arith.subf %130, %135 : vector<16x32xf32>
    %137 = arith.mulf %136, %136 : vector<16x32xf32>
    %cst_41 = arith.constant dense<0.000000e+00> : vector<16xf32>
    %138 = vector.multi_reduction <add>, %137, %cst_41 [1] : vector<16x32xf32> to vector<16xf32>
    %139 = vector.shape_cast %138 : vector<16xf32> to vector<16x1xf32>
    %cst_42 = arith.constant 3.200000e+01 : f32
    %140 = vector.broadcast %cst_42 : f32 to vector<16x1xf32>
    %141 = arith.divf %139, %140 : vector<16x1xf32>
    %142 = vector.broadcast %134 : vector<16x1xf32> to vector<16x32xf32>
    %143 = arith.subf %130, %142 : vector<16x32xf32>
    %cst_43 = arith.constant 9.99999996E-13 : f32
    %144 = vector.broadcast %cst_43 : f32 to vector<16x1xf32>
    %145 = arith.addf %141, %144 : vector<16x1xf32>
    %146 = math.rsqrt %145 : vector<16x1xf32>
    %147 = vector.broadcast %146 : vector<16x1xf32> to vector<16x32xf32>
    %148 = arith.mulf %143, %147 : vector<16x32xf32>
    %149 = vector.broadcast %36 : vector<1x32xf32> to vector<16x32xf32>
    %150 = arith.mulf %148, %149 : vector<16x32xf32>
    %151 = vector.broadcast %37 : vector<1x32xf32> to vector<16x32xf32>
    %152 = arith.addf %150, %151 : vector<16x32xf32>
    %153 = arith.truncf %152 : vector<16x32xf32> to vector<16x32xbf16>
    %c0_44 = arith.constant 0 : index
    %c0_45 = arith.constant 0 : index
    %c0_46 = arith.constant 0 : index
    %154 = vector.load %arg6[%c0_44, %c0_45, %c0_46] : memref<2x32x64xbf16, #tpu.memory_space<vmem>>, vector<1x32x64xbf16>
    %155 = vector.shape_cast %154 : vector<1x32x64xbf16> to vector<32x64xbf16>
    %cst_47 = arith.constant dense<0.000000e+00> : vector<16x64xf32>
    %156 = tpu.matmul %153, %155, %cst_47 {dimension_numbers = #tpu.dot_dimension_numbers<[1], [0], [0], [1], [0, 0, 1, 1], [], []>} : vector<16x32xbf16>, vector<32x64xbf16>, vector<16x64xf32> -> vector<16x64xf32>
    %c0_48 = arith.constant 0 : index
    %c0_49 = arith.constant 0 : index
    %c0_50 = arith.constant 0 : index
    %157 = vector.load %arg7[%c0_48, %c0_49, %c0_50] : memref<2x1x64xf32, #tpu.memory_space<vmem>>, vector<1x1x64xf32>
    %158 = vector.shape_cast %157 : vector<1x1x64xf32> to vector<1x64xf32>
    %159 = vector.broadcast %158 : vector<1x64xf32> to vector<16x64xf32>
    %160 = arith.addf %156, %159 : vector<16x64xf32>
    %cst_51 = arith.constant 5.000000e-01 : f32
    %161 = vector.broadcast %cst_51 : f32 to vector<16x64xf32>
    %162 = arith.mulf %161, %160 : vector<16x64xf32>
    %cst_52 = arith.constant 0.707106769 : f32
    %163 = vector.broadcast %cst_52 : f32 to vector<16x64xf32>
    %164 = arith.mulf %160, %163 : vector<16x64xf32>
    %165 = math.erf %164 : vector<16x64xf32>
    %cst_53 = arith.constant 1.000000e+00 : f32
    %166 = vector.broadcast %cst_53 : f32 to vector<16x64xf32>
    %167 = arith.addf %166, %165 : vector<16x64xf32>
    %168 = arith.mulf %162, %167 : vector<16x64xf32>
    %169 = arith.truncf %168 : vector<16x64xf32> to vector<16x64xbf16>
    %c0_54 = arith.constant 0 : index
    %c0_55 = arith.constant 0 : index
    %c0_56 = arith.constant 0 : index
    %170 = vector.load %arg8[%c0_54, %c0_55, %c0_56] : memref<2x64x32xbf16, #tpu.memory_space<vmem>>, vector<1x64x32xbf16>
    %171 = vector.shape_cast %170 : vector<1x64x32xbf16> to vector<64x32xbf16>
    %cst_57 = arith.constant dense<0.000000e+00> : vector<16x32xf32>
    %172 = tpu.matmul %169, %171, %cst_57 {dimension_numbers = #tpu.dot_dimension_numbers<[1], [0], [0], [1], [0, 0, 1, 1], [], []>} : vector<16x64xbf16>, vector<64x32xbf16>, vector<16x32xf32> -> vector<16x32xf32>
    %173 = vector.broadcast %38 : vector<1x32xf32> to vector<16x32xf32>
    %174 = arith.addf %172, %173 : vector<16x32xf32>
    %175 = arith.addf %152, %174 : vector<16x32xf32>
    %cst_58 = arith.constant dense<0.000000e+00> : vector<16xf32>
    %176 = vector.multi_reduction <add>, %175, %cst_58 [1] : vector<16x32xf32> to vector<16xf32>
    %177 = vector.shape_cast %176 : vector<16xf32> to vector<16x1xf32>
    %cst_59 = arith.constant 3.200000e+01 : f32
    %178 = vector.broadcast %cst_59 : f32 to vector<16x1xf32>
    %179 = arith.divf %177, %178 : vector<16x1xf32>
    %180 = vector.broadcast %179 : vector<16x1xf32> to vector<16x32xf32>
    %181 = arith.subf %175, %180 : vector<16x32xf32>
    %182 = arith.mulf %181, %181 : vector<16x32xf32>
    %cst_60 = arith.constant dense<0.000000e+00> : vector<16xf32>
    %183 = vector.multi_reduction <add>, %182, %cst_60 [1] : vector<16x32xf32> to vector<16xf32>
    %184 = vector.shape_cast %183 : vector<16xf32> to vector<16x1xf32>
    %cst_61 = arith.constant 3.200000e+01 : f32
    %185 = vector.broadcast %cst_61 : f32 to vector<16x1xf32>
    %186 = arith.divf %184, %185 : vector<16x1xf32>
    %187 = vector.broadcast %179 : vector<16x1xf32> to vector<16x32xf32>
    %188 = arith.subf %175, %187 : vector<16x32xf32>
    %cst_62 = arith.constant 9.99999996E-13 : f32
    %189 = vector.broadcast %cst_62 : f32 to vector<16x1xf32>
    %190 = arith.addf %186, %189 : vector<16x1xf32>
    %191 = math.rsqrt %190 : vector<16x1xf32>
    %192 = vector.broadcast %191 : vector<16x1xf32> to vector<16x32xf32>
    %193 = arith.mulf %188, %192 : vector<16x32xf32>
    %194 = vector.broadcast %39 : vector<1x32xf32> to vector<16x32xf32>
    %195 = arith.mulf %193, %194 : vector<16x32xf32>
    %196 = vector.broadcast %40 : vector<1x32xf32> to vector<16x32xf32>
    %197 = arith.addf %195, %196 : vector<16x32xf32>
    %c1 = arith.constant 1 : index
    %c0_63 = arith.constant 0 : index
    %c0_64 = arith.constant 0 : index
    %198 = vector.load %arg3[%c1, %c0_63, %c0_64] : memref<2x32x96xbf16, #tpu.memory_space<vmem>>, vector<1x32x96xbf16>
    %199 = vector.shape_cast %198 : vector<1x32x96xbf16> to vector<32x96xbf16>
    %c1_65 = arith.constant 1 : index
    %c0_66 = arith.constant 0 : index
    %c0_67 = arith.constant 0 : index
    %200 = vector.load %arg4[%c1_65, %c0_66, %c0_67] : memref<2x1x96xf32, #tpu.memory_space<vmem>>, vector<1x1x96xf32>
    %201 = vector.shape_cast %200 : vector<1x1x96xf32> to vector<1x96xf32>
    %c1_68 = arith.constant 1 : index
    %c0_69 = arith.constant 0 : index
    %c0_70 = arith.constant 0 : index
    %202 = vector.load %arg5[%c1_68, %c0_69, %c0_70] : memref<2x32x32xbf16, #tpu.memory_space<vmem>>, vector<1x32x32xbf16>
    %203 = vector.shape_cast %202 : vector<1x32x32xbf16> to vector<32x32xbf16>
    %c1_71 = arith.constant 1 : index
    %c0_72 = arith.constant 0 : index
    %c0_73 = arith.constant 0 : index
    %204 = vector.load %arg9[%c1_71, %c0_72, %c0_73] : memref<2x6x32xf32, #tpu.memory_space<vmem>>, vector<1x6x32xf32>
    %205 = vector.shape_cast %204 : vector<1x6x32xf32> to vector<6x32xf32>
    %206 = vector.extract_strided_slice %205 {offsets = [0, 0], sizes = [1, 32], strides = [1, 1]} : vector<6x32xf32> to vector<1x32xf32>
    %207 = vector.extract_strided_slice %205 {offsets = [1, 0], sizes = [1, 32], strides = [1, 1]} : vector<6x32xf32> to vector<1x32xf32>
    %208 = vector.extract_strided_slice %205 {offsets = [2, 0], sizes = [1, 32], strides = [1, 1]} : vector<6x32xf32> to vector<1x32xf32>
    %209 = vector.extract_strided_slice %205 {offsets = [3, 0], sizes = [1, 32], strides = [1, 1]} : vector<6x32xf32> to vector<1x32xf32>
    %210 = vector.extract_strided_slice %205 {offsets = [4, 0], sizes = [1, 32], strides = [1, 1]} : vector<6x32xf32> to vector<1x32xf32>
    %211 = vector.extract_strided_slice %205 {offsets = [5, 0], sizes = [1, 32], strides = [1, 1]} : vector<6x32xf32> to vector<1x32xf32>
    %212 = arith.truncf %197 : vector<16x32xf32> to vector<16x32xbf16>
    %cst_74 = arith.constant dense<0.000000e+00> : vector<16x96xf32>
    %213 = tpu.matmul %212, %199, %cst_74 {dimension_numbers = #tpu.dot_dimension_numbers<[1], [0], [0], [1], [0, 0, 1, 1], [], []>} : vector<16x32xbf16>, vector<32x96xbf16>, vector<16x96xf32> -> vector<16x96xf32>
    %214 = vector.broadcast %201 : vector<1x96xf32> to vector<16x96xf32>
    %215 = arith.addf %213, %214 : vector<16x96xf32>
    %216 = vector.extract_strided_slice %215 {offsets = [0, 0], sizes = [16, 8], strides = [1, 1]} : vector<16x96xf32> to vector<16x8xf32>
    %217 = arith.truncf %216 : vector<16x8xf32> to vector<16x8xbf16>
    %218 = vector.extract_strided_slice %215 {offsets = [0, 32], sizes = [16, 8], strides = [1, 1]} : vector<16x96xf32> to vector<16x8xf32>
    %219 = arith.truncf %218 : vector<16x8xf32> to vector<16x8xbf16>
    %220 = vector.extract_strided_slice %215 {offsets = [0, 64], sizes = [16, 8], strides = [1, 1]} : vector<16x96xf32> to vector<16x8xf32>
    %221 = arith.truncf %220 : vector<16x8xf32> to vector<16x8xbf16>
    %cst_75 = arith.constant dense<0.000000e+00> : vector<16x16xf32>
    %222 = tpu.matmul %217, %219, %cst_75 {dimension_numbers = #tpu.dot_dimension_numbers<[1], [1], [0], [0], [0, 0, 1, 0], [], []>} : vector<16x8xbf16>, vector<16x8xbf16>, vector<16x16xf32> -> vector<16x16xf32>
    %223 = arith.addf %222, %26 : vector<16x16xf32>
    %cst_76 = arith.constant dense<0xFF800000> : vector<16xf32>
    %224 = vector.multi_reduction <maximumf>, %223, %cst_76 [1] : vector<16x16xf32> to vector<16xf32>
    %225 = vector.shape_cast %224 : vector<16xf32> to vector<16x1xf32>
    %226 = vector.broadcast %225 : vector<16x1xf32> to vector<16x16xf32>
    %227 = arith.subf %223, %226 : vector<16x16xf32>
    %228 = math.exp %227 : vector<16x16xf32>
    %cst_77 = arith.constant dense<0.000000e+00> : vector<16xf32>
    %229 = vector.multi_reduction <add>, %228, %cst_77 [1] : vector<16x16xf32> to vector<16xf32>
    %230 = vector.shape_cast %229 : vector<16xf32> to vector<16x1xf32>
    %231 = tpu.reciprocal %230 {approx = true} : vector<16x1xf32> -> vector<16x1xf32>
    %232 = vector.broadcast %231 : vector<16x1xf32> to vector<16x16xf32>
    %233 = arith.mulf %228, %232 : vector<16x16xf32>
    %234 = arith.truncf %233 : vector<16x16xf32> to vector<16x16xbf16>
    %cst_78 = arith.constant dense<0.000000e+00> : vector<16x8xf32>
    %235 = tpu.matmul %234, %221, %cst_78 {dimension_numbers = #tpu.dot_dimension_numbers<[1], [0], [0], [1], [0, 0, 1, 1], [], []>} : vector<16x16xbf16>, vector<16x8xbf16>, vector<16x8xf32> -> vector<16x8xf32>
    %236 = vector.extract_strided_slice %215 {offsets = [0, 8], sizes = [16, 8], strides = [1, 1]} : vector<16x96xf32> to vector<16x8xf32>
    %237 = arith.truncf %236 : vector<16x8xf32> to vector<16x8xbf16>
    %238 = vector.extract_strided_slice %215 {offsets = [0, 40], sizes = [16, 8], strides = [1, 1]} : vector<16x96xf32> to vector<16x8xf32>
    %239 = arith.truncf %238 : vector<16x8xf32> to vector<16x8xbf16>
    %240 = vector.extract_strided_slice %215 {offsets = [0, 72], sizes = [16, 8], strides = [1, 1]} : vector<16x96xf32> to vector<16x8xf32>
    %241 = arith.truncf %240 : vector<16x8xf32> to vector<16x8xbf16>
    %cst_79 = arith.constant dense<0.000000e+00> : vector<16x16xf32>
    %242 = tpu.matmul %237, %239, %cst_79 {dimension_numbers = #tpu.dot_dimension_numbers<[1], [1], [0], [0], [0, 0, 1, 0], [], []>} : vector<16x8xbf16>, vector<16x8xbf16>, vector<16x16xf32> -> vector<16x16xf32>
    %243 = arith.addf %242, %26 : vector<16x16xf32>
    %cst_80 = arith.constant dense<0xFF800000> : vector<16xf32>
    %244 = vector.multi_reduction <maximumf>, %243, %cst_80 [1] : vector<16x16xf32> to vector<16xf32>
    %245 = vector.shape_cast %244 : vector<16xf32> to vector<16x1xf32>
    %246 = vector.broadcast %245 : vector<16x1xf32> to vector<16x16xf32>
    %247 = arith.subf %243, %246 : vector<16x16xf32>
    %248 = math.exp %247 : vector<16x16xf32>
    %cst_81 = arith.constant dense<0.000000e+00> : vector<16xf32>
    %249 = vector.multi_reduction <add>, %248, %cst_81 [1] : vector<16x16xf32> to vector<16xf32>
    %250 = vector.shape_cast %249 : vector<16xf32> to vector<16x1xf32>
    %251 = tpu.reciprocal %250 {approx = true} : vector<16x1xf32> -> vector<16x1xf32>
    %252 = vector.broadcast %251 : vector<16x1xf32> to vector<16x16xf32>
    %253 = arith.mulf %248, %252 : vector<16x16xf32>
    %254 = arith.truncf %253 : vector<16x16xf32> to vector<16x16xbf16>
    %cst_82 = arith.constant dense<0.000000e+00> : vector<16x8xf32>
    %255 = tpu.matmul %254, %241, %cst_82 {dimension_numbers = #tpu.dot_dimension_numbers<[1], [0], [0], [1], [0, 0, 1, 1], [], []>} : vector<16x16xbf16>, vector<16x8xbf16>, vector<16x8xf32> -> vector<16x8xf32>
    %256 = vector.extract_strided_slice %215 {offsets = [0, 16], sizes = [16, 8], strides = [1, 1]} : vector<16x96xf32> to vector<16x8xf32>
    %257 = arith.truncf %256 : vector<16x8xf32> to vector<16x8xbf16>
    %258 = vector.extract_strided_slice %215 {offsets = [0, 48], sizes = [16, 8], strides = [1, 1]} : vector<16x96xf32> to vector<16x8xf32>
    %259 = arith.truncf %258 : vector<16x8xf32> to vector<16x8xbf16>
    %260 = vector.extract_strided_slice %215 {offsets = [0, 80], sizes = [16, 8], strides = [1, 1]} : vector<16x96xf32> to vector<16x8xf32>
    %261 = arith.truncf %260 : vector<16x8xf32> to vector<16x8xbf16>
    %cst_83 = arith.constant dense<0.000000e+00> : vector<16x16xf32>
    %262 = tpu.matmul %257, %259, %cst_83 {dimension_numbers = #tpu.dot_dimension_numbers<[1], [1], [0], [0], [0, 0, 1, 0], [], []>} : vector<16x8xbf16>, vector<16x8xbf16>, vector<16x16xf32> -> vector<16x16xf32>
    %263 = arith.addf %262, %26 : vector<16x16xf32>
    %cst_84 = arith.constant dense<0xFF800000> : vector<16xf32>
    %264 = vector.multi_reduction <maximumf>, %263, %cst_84 [1] : vector<16x16xf32> to vector<16xf32>
    %265 = vector.shape_cast %264 : vector<16xf32> to vector<16x1xf32>
    %266 = vector.broadcast %265 : vector<16x1xf32> to vector<16x16xf32>
    %267 = arith.subf %263, %266 : vector<16x16xf32>
    %268 = math.exp %267 : vector<16x16xf32>
    %cst_85 = arith.constant dense<0.000000e+00> : vector<16xf32>
    %269 = vector.multi_reduction <add>, %268, %cst_85 [1] : vector<16x16xf32> to vector<16xf32>
    %270 = vector.shape_cast %269 : vector<16xf32> to vector<16x1xf32>
    %271 = tpu.reciprocal %270 {approx = true} : vector<16x1xf32> -> vector<16x1xf32>
    %272 = vector.broadcast %271 : vector<16x1xf32> to vector<16x16xf32>
    %273 = arith.mulf %268, %272 : vector<16x16xf32>
    %274 = arith.truncf %273 : vector<16x16xf32> to vector<16x16xbf16>
    %cst_86 = arith.constant dense<0.000000e+00> : vector<16x8xf32>
    %275 = tpu.matmul %274, %261, %cst_86 {dimension_numbers = #tpu.dot_dimension_numbers<[1], [0], [0], [1], [0, 0, 1, 1], [], []>} : vector<16x16xbf16>, vector<16x8xbf16>, vector<16x8xf32> -> vector<16x8xf32>
    %276 = vector.extract_strided_slice %215 {offsets = [0, 24], sizes = [16, 8], strides = [1, 1]} : vector<16x96xf32> to vector<16x8xf32>
    %277 = arith.truncf %276 : vector<16x8xf32> to vector<16x8xbf16>
    %278 = vector.extract_strided_slice %215 {offsets = [0, 56], sizes = [16, 8], strides = [1, 1]} : vector<16x96xf32> to vector<16x8xf32>
    %279 = arith.truncf %278 : vector<16x8xf32> to vector<16x8xbf16>
    %280 = vector.extract_strided_slice %215 {offsets = [0, 88], sizes = [16, 8], strides = [1, 1]} : vector<16x96xf32> to vector<16x8xf32>
    %281 = arith.truncf %280 : vector<16x8xf32> to vector<16x8xbf16>
    %cst_87 = arith.constant dense<0.000000e+00> : vector<16x16xf32>
    %282 = tpu.matmul %277, %279, %cst_87 {dimension_numbers = #tpu.dot_dimension_numbers<[1], [1], [0], [0], [0, 0, 1, 0], [], []>} : vector<16x8xbf16>, vector<16x8xbf16>, vector<16x16xf32> -> vector<16x16xf32>
    %283 = arith.addf %282, %26 : vector<16x16xf32>
    %cst_88 = arith.constant dense<0xFF800000> : vector<16xf32>
    %284 = vector.multi_reduction <maximumf>, %283, %cst_88 [1] : vector<16x16xf32> to vector<16xf32>
    %285 = vector.shape_cast %284 : vector<16xf32> to vector<16x1xf32>
    %286 = vector.broadcast %285 : vector<16x1xf32> to vector<16x16xf32>
    %287 = arith.subf %283, %286 : vector<16x16xf32>
    %288 = math.exp %287 : vector<16x16xf32>
    %cst_89 = arith.constant dense<0.000000e+00> : vector<16xf32>
    %289 = vector.multi_reduction <add>, %288, %cst_89 [1] : vector<16x16xf32> to vector<16xf32>
    %290 = vector.shape_cast %289 : vector<16xf32> to vector<16x1xf32>
    %291 = tpu.reciprocal %290 {approx = true} : vector<16x1xf32> -> vector<16x1xf32>
    %292 = vector.broadcast %291 : vector<16x1xf32> to vector<16x16xf32>
    %293 = arith.mulf %288, %292 : vector<16x16xf32>
    %294 = arith.truncf %293 : vector<16x16xf32> to vector<16x16xbf16>
    %cst_90 = arith.constant dense<0.000000e+00> : vector<16x8xf32>
    %295 = tpu.matmul %294, %281, %cst_90 {dimension_numbers = #tpu.dot_dimension_numbers<[1], [0], [0], [1], [0, 0, 1, 1], [], []>} : vector<16x16xbf16>, vector<16x8xbf16>, vector<16x8xf32> -> vector<16x8xf32>
    %296 = tpu.concatenate %235, %255, %275, %295 in 1 : vector<16x8xf32>, vector<16x8xf32>, vector<16x8xf32>, vector<16x8xf32> -> vector<16x32xf32>
    %297 = arith.truncf %296 : vector<16x32xf32> to vector<16x32xbf16>
    %cst_91 = arith.constant dense<0.000000e+00> : vector<16x32xf32>
    %298 = tpu.matmul %297, %203, %cst_91 {dimension_numbers = #tpu.dot_dimension_numbers<[1], [0], [0], [1], [0, 0, 1, 1], [], []>} : vector<16x32xbf16>, vector<32x32xbf16>, vector<16x32xf32> -> vector<16x32xf32>
    %299 = vector.broadcast %206 : vector<1x32xf32> to vector<16x32xf32>
    %300 = arith.addf %298, %299 : vector<16x32xf32>
    %301 = arith.addf %197, %300 : vector<16x32xf32>
    %cst_92 = arith.constant dense<0.000000e+00> : vector<16xf32>
    %302 = vector.multi_reduction <add>, %301, %cst_92 [1] : vector<16x32xf32> to vector<16xf32>
    %303 = vector.shape_cast %302 : vector<16xf32> to vector<16x1xf32>
    %cst_93 = arith.constant 3.200000e+01 : f32
    %304 = vector.broadcast %cst_93 : f32 to vector<16x1xf32>
    %305 = arith.divf %303, %304 : vector<16x1xf32>
    %306 = vector.broadcast %305 : vector<16x1xf32> to vector<16x32xf32>
    %307 = arith.subf %301, %306 : vector<16x32xf32>
    %308 = arith.mulf %307, %307 : vector<16x32xf32>
    %cst_94 = arith.constant dense<0.000000e+00> : vector<16xf32>
    %309 = vector.multi_reduction <add>, %308, %cst_94 [1] : vector<16x32xf32> to vector<16xf32>
    %310 = vector.shape_cast %309 : vector<16xf32> to vector<16x1xf32>
    %cst_95 = arith.constant 3.200000e+01 : f32
    %311 = vector.broadcast %cst_95 : f32 to vector<16x1xf32>
    %312 = arith.divf %310, %311 : vector<16x1xf32>
    %313 = vector.broadcast %305 : vector<16x1xf32> to vector<16x32xf32>
    %314 = arith.subf %301, %313 : vector<16x32xf32>
    %cst_96 = arith.constant 9.99999996E-13 : f32
    %315 = vector.broadcast %cst_96 : f32 to vector<16x1xf32>
    %316 = arith.addf %312, %315 : vector<16x1xf32>
    %317 = math.rsqrt %316 : vector<16x1xf32>
    %318 = vector.broadcast %317 : vector<16x1xf32> to vector<16x32xf32>
    %319 = arith.mulf %314, %318 : vector<16x32xf32>
    %320 = vector.broadcast %207 : vector<1x32xf32> to vector<16x32xf32>
    %321 = arith.mulf %319, %320 : vector<16x32xf32>
    %322 = vector.broadcast %208 : vector<1x32xf32> to vector<16x32xf32>
    %323 = arith.addf %321, %322 : vector<16x32xf32>
    %324 = arith.truncf %323 : vector<16x32xf32> to vector<16x32xbf16>
    %c1_97 = arith.constant 1 : index
    %c0_98 = arith.constant 0 : index
    %c0_99 = arith.constant 0 : index
    %325 = vector.load %arg6[%c1_97, %c0_98, %c0_99] : memref<2x32x64xbf16, #tpu.memory_space<vmem>>, vector<1x32x64xbf16>
    %326 = vector.shape_cast %325 : vector<1x32x64xbf16> to vector<32x64xbf16>
    %cst_100 = arith.constant dense<0.000000e+00> : vector<16x64xf32>
    %327 = tpu.matmul %324, %326, %cst_100 {dimension_numbers = #tpu.dot_dimension_numbers<[1], [0], [0], [1], [0, 0, 1, 1], [], []>} : vector<16x32xbf16>, vector<32x64xbf16>, vector<16x64xf32> -> vector<16x64xf32>
    %c1_101 = arith.constant 1 : index
    %c0_102 = arith.constant 0 : index
    %c0_103 = arith.constant 0 : index
    %328 = vector.load %arg7[%c1_101, %c0_102, %c0_103] : memref<2x1x64xf32, #tpu.memory_space<vmem>>, vector<1x1x64xf32>
    %329 = vector.shape_cast %328 : vector<1x1x64xf32> to vector<1x64xf32>
    %330 = vector.broadcast %329 : vector<1x64xf32> to vector<16x64xf32>
    %331 = arith.addf %327, %330 : vector<16x64xf32>
    %cst_104 = arith.constant 5.000000e-01 : f32
    %332 = vector.broadcast %cst_104 : f32 to vector<16x64xf32>
    %333 = arith.mulf %332, %331 : vector<16x64xf32>
    %cst_105 = arith.constant 0.707106769 : f32
    %334 = vector.broadcast %cst_105 : f32 to vector<16x64xf32>
    %335 = arith.mulf %331, %334 : vector<16x64xf32>
    %336 = math.erf %335 : vector<16x64xf32>
    %cst_106 = arith.constant 1.000000e+00 : f32
    %337 = vector.broadcast %cst_106 : f32 to vector<16x64xf32>
    %338 = arith.addf %337, %336 : vector<16x64xf32>
    %339 = arith.mulf %333, %338 : vector<16x64xf32>
    %340 = arith.truncf %339 : vector<16x64xf32> to vector<16x64xbf16>
    %c1_107 = arith.constant 1 : index
    %c0_108 = arith.constant 0 : index
    %c0_109 = arith.constant 0 : index
    %341 = vector.load %arg8[%c1_107, %c0_108, %c0_109] : memref<2x64x32xbf16, #tpu.memory_space<vmem>>, vector<1x64x32xbf16>
    %342 = vector.shape_cast %341 : vector<1x64x32xbf16> to vector<64x32xbf16>
    %cst_110 = arith.constant dense<0.000000e+00> : vector<16x32xf32>
    %343 = tpu.matmul %340, %342, %cst_110 {dimension_numbers = #tpu.dot_dimension_numbers<[1], [0], [0], [1], [0, 0, 1, 1], [], []>} : vector<16x64xbf16>, vector<64x32xbf16>, vector<16x32xf32> -> vector<16x32xf32>
    %344 = vector.broadcast %209 : vector<1x32xf32> to vector<16x32xf32>
    %345 = arith.addf %343, %344 : vector<16x32xf32>
    %346 = arith.addf %323, %345 : vector<16x32xf32>
    %cst_111 = arith.constant dense<0.000000e+00> : vector<16xf32>
    %347 = vector.multi_reduction <add>, %346, %cst_111 [1] : vector<16x32xf32> to vector<16xf32>
    %348 = vector.shape_cast %347 : vector<16xf32> to vector<16x1xf32>
    %cst_112 = arith.constant 3.200000e+01 : f32
    %349 = vector.broadcast %cst_112 : f32 to vector<16x1xf32>
    %350 = arith.divf %348, %349 : vector<16x1xf32>
    %351 = vector.broadcast %350 : vector<16x1xf32> to vector<16x32xf32>
    %352 = arith.subf %346, %351 : vector<16x32xf32>
    %353 = arith.mulf %352, %352 : vector<16x32xf32>
    %cst_113 = arith.constant dense<0.000000e+00> : vector<16xf32>
    %354 = vector.multi_reduction <add>, %353, %cst_113 [1] : vector<16x32xf32> to vector<16xf32>
    %355 = vector.shape_cast %354 : vector<16xf32> to vector<16x1xf32>
    %cst_114 = arith.constant 3.200000e+01 : f32
    %356 = vector.broadcast %cst_114 : f32 to vector<16x1xf32>
    %357 = arith.divf %355, %356 : vector<16x1xf32>
    %358 = vector.broadcast %350 : vector<16x1xf32> to vector<16x32xf32>
    %359 = arith.subf %346, %358 : vector<16x32xf32>
    %cst_115 = arith.constant 9.99999996E-13 : f32
    %360 = vector.broadcast %cst_115 : f32 to vector<16x1xf32>
    %361 = arith.addf %357, %360 : vector<16x1xf32>
    %362 = math.rsqrt %361 : vector<16x1xf32>
    %363 = vector.broadcast %362 : vector<16x1xf32> to vector<16x32xf32>
    %364 = arith.mulf %359, %363 : vector<16x32xf32>
    %365 = vector.broadcast %210 : vector<1x32xf32> to vector<16x32xf32>
    %366 = arith.mulf %364, %365 : vector<16x32xf32>
    %367 = vector.broadcast %211 : vector<1x32xf32> to vector<16x32xf32>
    %368 = arith.addf %366, %367 : vector<16x32xf32>
    %369 = tpu.iota {dimensions = array<i32: 1>} : vector<2x16xi32>
    %370 = tpu.iota {dimensions = array<i32: 0>} : vector<2x16xi32>
    %c8_i32 = arith.constant 8 : i32
    %371 = vector.broadcast %c8_i32 : i32 to vector<2x16xi32>
    %372 = arith.muli %370, %371 : vector<2x16xi32>
    %373 = arith.cmpi eq, %369, %372 : vector<2x16xi32>
    %374 = arith.extui %373 : vector<2x16xi1> to vector<2x16xi32>
    %375 = arith.sitofp %374 : vector<2x16xi32> to vector<2x16xf32>
    %376 = arith.truncf %375 : vector<2x16xf32> to vector<2x16xbf16>
    %377 = arith.truncf %368 : vector<16x32xf32> to vector<16x32xbf16>
    %cst_116 = arith.constant dense<0.000000e+00> : vector<2x32xf32>
    %378 = tpu.matmul %376, %377, %cst_116 {dimension_numbers = #tpu.dot_dimension_numbers<[1], [0], [0], [1], [0, 0, 1, 1], [], []>} : vector<2x16xbf16>, vector<16x32xbf16>, vector<2x32xf32> -> vector<2x32xf32>
    %379 = arith.truncf %378 : vector<2x32xf32> to vector<2x32xbf16>
    %c0_117 = arith.constant 0 : index
    %c0_118 = arith.constant 0 : index
    %380 = vector.load %arg10[%c0_117, %c0_118] : memref<32x32xbf16, #tpu.memory_space<vmem>>, vector<32x32xbf16>
    %cst_119 = arith.constant dense<0.000000e+00> : vector<2x32xf32>
    %381 = tpu.matmul %379, %380, %cst_119 {dimension_numbers = #tpu.dot_dimension_numbers<[1], [0], [0], [1], [0, 0, 1, 1], [], []>} : vector<2x32xbf16>, vector<32x32xbf16>, vector<2x32xf32> -> vector<2x32xf32>
    %c0_120 = arith.constant 0 : index
    %c0_121 = arith.constant 0 : index
    %382 = vector.load %arg11[%c0_120, %c0_121] : memref<1x32xf32, #tpu.memory_space<vmem>>, vector<1x32xf32>
    %383 = vector.broadcast %382 : vector<1x32xf32> to vector<2x32xf32>
    %384 = arith.addf %381, %383 : vector<2x32xf32>
    %385 = math.tanh %384 : vector<2x32xf32>
    %386 = arith.truncf %385 : vector<2x32xf32> to vector<2x32xbf16>
    %c0_122 = arith.constant 0 : index
    %c0_123 = arith.constant 0 : index
    %387 = vector.load %arg12[%c0_122, %c0_123] : memref<32x2xbf16, #tpu.memory_space<vmem>>, vector<32x2xbf16>
    %cst_124 = arith.constant dense<0.000000e+00> : vector<2x2xf32>
    %388 = tpu.matmul %386, %387, %cst_124 {dimension_numbers = #tpu.dot_dimension_numbers<[1], [0], [0], [1], [0, 0, 1, 1], [], []>} : vector<2x32xbf16>, vector<32x2xbf16>, vector<2x2xf32> -> vector<2x2xf32>
    %c0_125 = arith.constant 0 : index
    %c0_126 = arith.constant 0 : index
    %389 = vector.load %arg13[%c0_125, %c0_126] : memref<1x2xf32, #tpu.memory_space<vmem>>, vector<1x2xf32>
    %390 = vector.broadcast %389 : vector<1x2xf32> to vector<2x2xf32>
    %391 = arith.addf %388, %390 : vector<2x2xf32>
    %c0_127 = arith.constant 0 : index
    %c0_128 = arith.constant 0 : index
    %392 = vector.load %arg14[%c0_127, %c0_128] : memref<2x2xf32, #tpu.memory_space<vmem>>, vector<2x2xf32>
    tpu.vector_store %arg14[%c0_127, %c0_128], %391 {strides = array<i32>} : memref<2x2xf32, #tpu.memory_space<vmem>>, vector<2x2xf32>,
    return
  }
}

</mosaic_0001>

<bundles_post_ra>
// kernel: bert_nsp_forward.1
= control target key start
LH: loop header
LB: loop body
LE: loop exit
PB: predicated region body
PF: predicated region fallthrough
CT: control target
= control target key end

     0   :  { %vm52_vm0 = vcmask 261120   ;;  %s3166_s0 = inlined_call_operand.vmem [shape: f32[16,32], index: 0, kind: input, shape index: {}]   ;;  %s3167_s1 = inlined_call_operand.vmem [shape: f32[16,16], index: 1, kind: input, shape index: {}]   ;;  %s3168_s2 = inlined_call_operand.vmem [shape: f32[2,32], index: 2, kind: input, shape index: {}]   ;;  %s3169_s3 = inlined_call_operand.vmem [shape: bf16[2,32,96], index: 3, kind: input, shape index: {}]   ;;  %s3170_s4 = inlined_call_operand.vmem [shape: f32[2,1,96], index: 4, kind: input, shape index: {}]   ;;  %s3171_s5 = inlined_call_operand.vmem [shape: bf16[2,32,32], index: 5, kind: input, shape index: {}]   ;;  %s3172_s6 = inlined_call_operand.vmem [shape: bf16[2,32,64], index: 6, kind: input, shape index: {}]   ;;  %s3173_s7 = inlined_call_operand.vmem [shape: f32[2,1,64], index: 7, kind: input, shape index: {}]   ;;  %s3174_s8 = inlined_call_operand.vmem [shape: bf16[2,64,32], index: 8, kind: input, shape index: {}]   ;;  %s3175_s9 = inlined_call_operand.vmem [shape: f32[2,6,32], index: 9, kind: input, shape index: {}]   ;;  %s3176_s10 = inlined_call_operand.vmem [shape: bf16[32,32], index: 10, kind: input, shape index: {}]   ;;  %s3177_s11 = inlined_call_operand.vmem [shape: f32[1,32], index: 11, kind: input, shape index: {}]   ;;  %s3178_s12 = inlined_call_operand.vmem [shape: bf16[32,2], index: 12, kind: input, shape index: {}]   ;;  %s3179_s13 = inlined_call_operand.vmem [shape: f32[1,2], index: 13, kind: input, shape index: {}]   ;;  %s3180_s14 = inlined_call_operand.hbm [shape: f32[2,2], index: 14, kind: output, shape index: {}]  }
   0x1   :  { %v50_v0 = vld [vmem:[%s3166_s0] sm:$0xff]  ;;  %v51_v1 = vld [vmem:[%s3166_s0 + $0x8] sm:$0xff] }
   0x2   :  { %v53_v2 = vsel %vm52_vm0, %v50_v0, 0.0  ;;  %v56_v3 = vsel %vm52_vm0, %v51_v1, 0.0 }
   0x3   :  { %54 = vadd.xlane.f32.xlu0 %v53_v2 }
   0x7   :  { %57 = vadd.xlane.f32.xlu0 %v56_v3 }
   0x8   :  { %19 = vsyncpa [#allocation3], 0  ;;  %v2469_v14 = vld [vmem:[%s3169_s3] sm:$0xff]   ;;  %v2611_v15 = vmov 0.0   ;;  %v2470_v16 = vld [vmem:[%s3169_s3 + $0x8] sm:$0xff]   ;;  %vm2612_vm1 = vmmov 0   ;;  %v80_v21 = vlaneseq }
   0x9   :  { %2232 = vmatprep.subr.bf16.mxu0 %v2611_v15  ;;  %2240 = vmatprep.subr.bf16.mxu1 %v2611_v15  ;;  %v49_v26 = vld [vmem:[%s3168_s2] sm:$0x3]  ;;  %s2613_s23 = smov 88   ;;  %s2614_s24 = smov 96   ;;  %vm171_vm2 = vcmask 64512   ;;  %v2798_v60 = vld [vmem:[%s3167_s1 + $0x8] sm:$0xff] }
   0xa   :  { %2233 = vmatpush3.bf16.msra.mxu0 %v2469_v14  ;;  %2236 = vmatprep.mubr.msk.bf16.mxu0 %vm2612_vm1, %v2611_v15  ;;  %v2728_v24 = vshrl.u32 %v80_v21, 7  ;;  %v2083_v39 = vld [vmem:[%s3170_s4] ss:$0 sm:$0xff]  ;;  %s2615_s25 = smov 120   ;;  %s2616_s26 = smov 112   ;;  %vm219_vm3 = vcmask 130048  }
   0xb   :  { %2234 = vmatprep.subr.bf16.mxu0 %v2611_v15  ;;  %2242 = vmatprep.mubr.msk.bf16.mxu1 %vm2612_vm1, %v2611_v15  ;;  %s2617_s27 = smov 80   ;;  %s2618_s28 = smov 104   ;;  %v2793_v58 = vld [vmem:[%s3167_s1] sm:$0xff]  ;;  %vm681_vm4 = vcmask 195584   ;;  %vm900_vm5 = vcmask 523264   ;;  %vm2067_vm7 = vcmask 9216  }
   0xc   :  { %v2731_v25 = vsub.s32 0, %v2728_v24  ;;  %v2738_v30 = vsub.s32 1, %v2728_v24  ;;  %s2619_s29 = smov 72   ;;  %s2620_s1 = smov 64  }
   0xd   :  { %s2621_s17 = smov 48   ;;  %s2622_s18 = smov 40  }
   0xe   :  { %2235 = vmatpush3.bf16.msra.mxu0 %v2470_v16  ;;  %v83_v29 = vrot.slane %v49_v26, %v2731_v25  ;;  %v89_v34 = vrot.slane %v49_v26, %v2738_v30  ;;  %s2623_s19 = smov 56   ;;  %s2624_s2 = smov 8  }
   0xf   :  { %2246 = vmatprep.subr.bf16.mxu0 %v2611_v15  ;;  %s3182_s15 = smov 16   ;;  %s3181_s16 = smov 24  }
  0x90   :  { %v55_v4 = vpop.xlane.xlu0 %54 }
  0x91   :  { %v60_v5 = vmul.f32 0.03125, %v55_v4 }
  0x93   :  { %v62_v6 = vsub.f32 %v50_v0, %v60_v5 }
  0x94   :  { %v58_v7 = vpop.xlane.xlu0 %57 }
  0x95   :  { %v61_v8 = vmul.f32 0.03125, %v58_v7  ;;  %v64_v9 = vmul.f32 %v62_v6, %v62_v6 }
  0x97   :  { %v63_v10 = vsub.f32 %v51_v1, %v61_v8  ;;  %v66_v11 = vsel %vm52_vm0, %v64_v9, 0.0 }
  0x98   :  { %67 = vadd.xlane.f32.xlu1 %v66_v11 }
  0x99   :  { %v65_v12 = vmul.f32 %v63_v10, %v63_v10 }
  0x9b   :  { %v69_v13 = vsel %vm52_vm0, %v65_v12, 0.0 }
  0x9c   :  { %70 = vadd.xlane.f32.xlu1 %v69_v13 }
 0x125   :  { %v68_v17 = vpop.xlane.xlu1 %67 }
 0x126   :  { %v72_v18 = vmul.f32 0.03125, %v68_v17 }
 0x128   :  { %v74_v19 = vadd.f32 1e-12, %v72_v18 }
 0x129   :  { %v71_v20 = vpop.xlane.xlu1 %70 }
 0x12a   :  { %2493 = vrsqrt.f32 %v74_v19  ;;  %v73_v22 = vmul.f32 0.03125, %v71_v20 }
 0x12c   :  { %v75_v23 = vadd.f32 1e-12, %v73_v22 }
 0x12e   :  { %2495 = vrsqrt.f32 %v75_v23 }
 0x134   :  { %v2494_v27 = vpop.eup %2493 }
 0x135   :  { %v78_v28 = vmul.f32 %v2494_v27, %v62_v6 }
 0x137   :  { %v84_v33 = vmul.f32 %v83_v29, %v78_v28 }
 0x138   :  { %v2496_v31 = vpop.eup %2495 }
 0x139   :  { %v79_v32 = vmul.f32 %v2496_v31, %v63_v10  ;;  %v2741_v36 = vadd.f32 %v89_v34, %v84_v33 }
 0x13b   :  { %v85_v35 = vmul.f32 %v83_v29, %v79_v32 }
 0x13d   :  { %v2743_v37 = vadd.f32 %v89_v34, %v85_v35 }
 0x13f   :  { %v104_v38 = vpack.c.bf16 %v2743_v37, %v2741_v36 }
 0x141   :  { %2237 = vmatmul.mubr.msk.bf16.vlgmr.msra.gmra.mrb[0].mxu0 %vm52_vm0, %v104_v38 }
 0x142   :  { %2248 = vmatprep.mubr.msk.bf16.mxu0 %vm2612_vm1, %v2611_v15 }
 0x214   :  { %v160_v40 = vpop.f32.mrb[0].mxu0 }
 0x215   :  { %v2238_v41 = vpop.f32.mrb[1].mxu0  ;;  %v161_v43 = vadd.f32 %v2083_v39, %v160_v40 }
 0x216   :  { %v163_v42 = vpop.f32.mrb[2].mxu0 }
 0x217   :  { %v164_v44 = vadd.f32 %v2083_v39, %v163_v42  ;;  %v2239_v45 = vpop.f32.mrb[3].mxu0 }
 0x219   :  { %v2753_v46 = vpack.c.bf16 %v164_v44, %v161_v43 }
 0x21b   :  { %292 = vrot.lane.b32.xlu1 %v2753_v46, %s2613_s23  ;;  %169 = vrot.lane.b32.xlu0 %v2753_v46, %s2614_s24 }
 0x21f   :  { %290 = vrot.lane.b32.xlu1 %v2753_v46, %s2615_s25  ;;  %411 = vrot.lane.b32.xlu0 %v2753_v46, %s2616_s26 }
 0x223   :  { %413 = vrot.lane.b32.xlu1 %v2753_v46, %s2617_s27  ;;  %532 = vrot.lane.b32.xlu0 %v2753_v46, %s2618_s28 }
 0x227   :  { %534 = vrot.lane.b32.xlu1 %v2753_v46, %s2619_s29 }
 0x28d   :  { %v170_v47 = vpop.permute.xlu0 %169  ;;  %v293_v49 = vpop.permute.xlu1 %292 }
 0x28e   :  { %v176_v48 = vsel %vm171_vm2, %v170_v47, 0  ;;  %v298_v51 = vsel %vm171_vm2, %v293_v49, 0 }
 0x28f   :  { %2241 = vmatpush3.bf16.xpose.msra.mxu1 %v176_v48 }
 0x290   :  { %2252 = vmatprep.subr.bf16.mxu1 %v2611_v15 }
 0x291   :  { %v291_v50 = vpop.permute.xlu1 %290  ;;  %v412_v55 = vpop.permute.xlu0 %411 }
 0x295   :  { %v414_v52 = vpop.permute.xlu1 %413  ;;  %v533_v57 = vpop.permute.xlu0 %532 }
 0x296   :  { %2243 = vmatmul.mubr.msk.bf16.vlgmr.msra.gmra.mrb[0].mxu1 %vm171_vm2, %v2753_v46  ;;  %v419_v53 = vsel %vm171_vm2, %v414_v52, 0 }
 0x297   :  { %2253 = vmatpush3.bf16.xpose.msra.mxu1 %v298_v51  ;;  %2254 = vmatprep.mubr.msk.bf16.mxu1 %vm2612_vm1, %v2611_v15 }
 0x298   :  { %2264 = vmatprep.subr.bf16.mxu1 %v2611_v15 }
 0x299   :  { %v535_v54 = vpop.permute.xlu1 %534 }
 0x29a   :  { %v540_v56 = vsel %vm171_vm2, %v535_v54, 0 }
 0x29e   :  { %2255 = vmatmul.mubr.msk.bf16.vlgmr.msra.gmra.mrb[4].mxu1 %vm171_vm2, %v291_v50 }
 0x29f   :  { %2265 = vmatpush3.bf16.xpose.msra.mxu1 %v419_v53  ;;  %2266 = vmatprep.mubr.msk.bf16.mxu1 %vm2612_vm1, %v2611_v15 }
 0x2a0   :  { %2276 = vmatprep.subr.bf16.mxu1 %v2611_v15 }
 0x2a6   :  { %2267 = vmatmul.mubr.msk.bf16.vlgmr.msra.gmra.mrb[8].mxu1 %vm171_vm2, %v412_v55 }
 0x2a7   :  { %2277 = vmatpush3.bf16.xpose.msra.mxu1 %v540_v56  ;;  %2278 = vmatprep.mubr.msk.bf16.mxu1 %vm2612_vm1, %v2611_v15 }
 0x2a8   :  { %2288 = vmatprep.subr.bf16.mxu1 %v2611_v15 }
 0x2ae   :  { %2279 = vmatmul.mubr.msk.bf16.vlgmr.msra.gmra.mrb[12].mxu1 %vm171_vm2, %v533_v57 }
 0x2af   :  { %2292 = vmatprep.mubr.msk.bf16.mxu1 %vm2612_vm1, %v2611_v15 }
 0x369   :  { %v212_v59 = vpop.f32.mrb[0].mxu1 }
 0x36a   :  { %v213_v61 = vadd.f32 %v212_v59, %v2793_v58  ;;  %v2244_v62 = vpop.f32.mrb[1].mxu1 }
 0x36b   :  { %v215_v63 = vpop.f32.mrb[2].mxu1 }
 0x36c   :  { %v216_v0 = vadd.f32 %v215_v63, %v2798_v60  ;;  %v2245_v1 = vpop.f32.mrb[3].mxu1  ;;  %v220_v2 = vsel %vm219_vm3, %v213_v61, -inf }
 0x36d   :  { %221 = vmax.xlane.f32.xlu1 %v220_v2 }
 0x36e   :  { %v223_v3 = vsel %vm219_vm3, %v216_v0, -inf }
 0x36f   :  { %224 = vmax.xlane.f32.xlu0 %v223_v3 }
 0x371   :  { %v334_v4 = vpop.f32.mrb[4].mxu1 }
 0x372   :  { %v335_v5 = vadd.f32 %v334_v4, %v2793_v58  ;;  %v2256_v6 = vpop.f32.mrb[5].mxu1 }
 0x373   :  { %v337_v7 = vpop.f32.mrb[6].mxu1 }
 0x374   :  { %v338_v8 = vadd.f32 %v337_v7, %v2798_v60  ;;  %v2257_v9 = vpop.f32.mrb[7].mxu1  ;;  %v341_v10 = vsel %vm219_vm3, %v335_v5, -inf }
 0x375   :  { %342 = vmax.xlane.f32.xlu0 %v341_v10 }
 0x376   :  { %v344_v11 = vsel %vm219_vm3, %v338_v8, -inf }
 0x379   :  { %345 = vmax.xlane.f32.xlu0 %v344_v11  ;;  %v455_v12 = vpop.f32.mrb[8].mxu1 }
 0x37a   :  { %v456_v13 = vadd.f32 %v455_v12, %v2793_v58  ;;  %v2268_v14 = vpop.f32.mrb[9].mxu1 }
 0x37b   :  { %v458_v16 = vpop.f32.mrb[10].mxu1 }
 0x37c   :  { %v459_v17 = vadd.f32 %v458_v16, %v2798_v60  ;;  %v2269_v18 = vpop.f32.mrb[11].mxu1  ;;  %v462_v19 = vsel %vm219_vm3, %v456_v13, -inf }
 0x37d   :  { %463 = vmax.xlane.f32.xlu1 %v462_v19 }
 0x37e   :  { %v465_v20 = vsel %vm219_vm3, %v459_v17, -inf }
 0x37f   :  { %466 = vmax.xlane.f32.xlu0 %v465_v20 }
 0x381   :  { %v576_v22 = vpop.f32.mrb[12].mxu1 }
 0x382   :  { %v577_v23 = vadd.f32 %v576_v22, %v2793_v58  ;;  %v2280_v26 = vpop.f32.mrb[13].mxu1 }
 0x383   :  { %v579_v27 = vpop.f32.mrb[14].mxu1 }
 0x384   :  { %v580_v28 = vadd.f32 %v579_v27, %v2798_v60  ;;  %v2281_v29 = vpop.f32.mrb[15].mxu1  ;;  %v583_v31 = vsel %vm219_vm3, %v577_v23, -inf }
 0x385   :  { %584 = vmax.xlane.f32.xlu1 %v583_v31 }
 0x386   :  { %v586_v32 = vsel %vm219_vm3, %v580_v28, -inf }
 0x387   :  { %587 = vmax.xlane.f32.xlu0 %v586_v32 }
 0x396   :  { %243 = vrot.lane.b32.xlu1 %v2753_v46, %s2620_s1 }
 0x3fa   :  { %v222_v33 = vpop.xlane.xlu1 %221 }
 0x3fb   :  { %v226_v34 = vsub.f32 %v213_v61, %v222_v33 }
 0x3fc   :  { %v225_v35 = vpop.xlane.xlu0 %224 }
 0x3fd   :  { %v228_v38 = vmul.f32 1.442695, %v226_v34  ;;  %v227_v39 = vsub.f32 %v216_v0, %v225_v35 }
 0x3ff   :  { %2497 = vpow2.f32 %v228_v38  ;;  %v230_v40 = vmul.f32 1.442695, %v227_v39 }
 0x401   :  { %2499 = vpow2.f32 %v230_v40 }
 0x402   :  { %v343_v41 = vpop.xlane.xlu0 %342 }
 0x403   :  { %v347_v42 = vsub.f32 %v335_v5, %v343_v41 }
 0x405   :  { %v349_v43 = vmul.f32 1.442695, %v347_v42 }
 0x406   :  { %v346_v44 = vpop.xlane.xlu0 %345 }
 0x407   :  { %2501 = vpow2.f32 %v349_v43  ;;  %v348_v45 = vsub.f32 %v338_v8, %v346_v44 }
 0x409   :  { %v2498_v47 = vpop.eup %2497  ;;  %v351_v48 = vmul.f32 1.442695, %v348_v45 }
 0x40a   :  { %v464_v49 = vpop.xlane.xlu1 %463  ;;  %v232_v50 = vsel %vm219_vm3, %v2498_v47, 0.0 }
 0x40b   :  { %v2500_v51 = vpop.eup %2499  ;;  %2503 = vpow2.f32 %v351_v48  ;;  %v468_v52 = vsub.f32 %v456_v13, %v464_v49  ;;  %233 = vadd.xlane.f32.xlu1 %v232_v50 }
 0x40c   :  { %v467_v53 = vpop.xlane.xlu0 %466  ;;  %v235_v54 = vsel %vm219_vm3, %v2500_v51, 0.0 }
 0x40d   :  { %v470_v55 = vmul.f32 1.442695, %v468_v52  ;;  %v469_v56 = vsub.f32 %v459_v17, %v467_v53  ;;  %236 = vadd.xlane.f32.xlu0 %v235_v54 }
 0x40f   :  { %2505 = vpow2.f32 %v470_v55  ;;  %v472_v57 = vmul.f32 1.442695, %v469_v56 }
 0x411   :  { %v2502_v59 = vpop.eup %2501  ;;  %2507 = vpow2.f32 %v472_v57 }
 0x412   :  { %v585_v61 = vpop.xlane.xlu1 %584  ;;  %v353_v62 = vsel %vm219_vm3, %v2502_v59, 0.0 }
 0x413   :  { %v589_v63 = vsub.f32 %v577_v23, %v585_v61  ;;  %354 = vadd.xlane.f32.xlu1 %v353_v62  ;;  %v2471_v62 = vld [vmem:[%s3171_s5] sm:$0xff]  }
 0x414   :  { %v588_v0 = vpop.xlane.xlu0 %587  ;;  %2289 = vmatpush3.bf16.msra.mxu1 %v2471_v62 }
 0x415   :  { %v2504_v1 = vpop.eup %2503  ;;  %v591_v2 = vmul.f32 1.442695, %v589_v63  ;;  %v590_v3 = vsub.f32 %v580_v28, %v588_v0  ;;  %2290 = vmatprep.subr.bf16.mxu1 %v2611_v15 }
 0x416   :  { %v244_v4 = vpop.permute.xlu1 %243  ;;  %v356_v5 = vsel %vm219_vm3, %v2504_v1, 0.0 }
 0x417   :  { %2509 = vpow2.f32 %v591_v2  ;;  %v593_v6 = vmul.f32 1.442695, %v590_v3  ;;  %2247 = vmatpush3.bf16.msra.mxu0 %v244_v4  ;;  %357 = vadd.xlane.f32.xlu0 %v356_v5  ;;  %v2472_v3 = vld [vmem:[%s3171_s5 + $0x8] sm:$0xff]  }
 0x418   :  { %2258 = vmatprep.subr.bf16.mxu0 %v2611_v15  ;;  %2291 = vmatpush3.bf16.msra.mxu1 %v2472_v3 }
 0x419   :  { %v2506_v7 = vpop.eup %2505  ;;  %2511 = vpow2.f32 %v593_v6  ;;  %2304 = vmatprep.subr.bf16.mxu1 %v2611_v15 }
 0x41a   :  { %v474_v8 = vsel %vm219_vm3, %v2506_v7, 0.0 }
 0x41b   :  { %v2508_v9 = vpop.eup %2507  ;;  %475 = vadd.xlane.f32.xlu1 %v474_v8 }
 0x41c   :  { %v477_v10 = vsel %vm219_vm3, %v2508_v9, 0.0 }
 0x41d   :  { %478 = vadd.xlane.f32.xlu0 %v477_v10 }
 0x421   :  { %v2510_v11 = vpop.eup %2509 }
 0x422   :  { %v595_v12 = vsel %vm219_vm3, %v2510_v11, 0.0 }
 0x423   :  { %v2512_v13 = vpop.eup %2511  ;;  %596 = vadd.xlane.f32.xlu1 %v595_v12 }
 0x424   :  { %v598_v14 = vsel %vm219_vm3, %v2512_v13, 0.0 }
 0x425   :  { %599 = vadd.xlane.f32.xlu0 %v598_v14 }
 0x434   :  { %485 = vrot.lane.b32.xlu1 %v2753_v46, %s2621_s17 }
 0x438   :  { %606 = vrot.lane.b32.xlu1 %v2753_v46, %s2622_s18 }
 0x43b   :  { %364 = vrot.lane.b32.xlu0 %v2753_v46, %s2623_s19 }
 0x498   :  { %v234_v16 = vpop.xlane.xlu1 %233 }
 0x499   :  { %2513 = vrcp.f32 %v234_v16 }
 0x49a   :  { %v237_v17 = vpop.xlane.xlu0 %236 }
 0x49b   :  { %2515 = vrcp.f32 %v237_v17 }
 0x4a0   :  { %v355_v26 = vpop.xlane.xlu1 %354 }
 0x4a3   :  { %v2514_v18 = vpop.eup %2513 }
 0x4a4   :  { %v358_v19 = vpop.xlane.xlu0 %357  ;;  %v240_v22 = vmul.f32 %v2514_v18, %v2498_v47 }
 0x4a5   :  { %v2516_v20 = vpop.eup %2515  ;;  %2517 = vrcp.f32 %v358_v19 }
 0x4a6   :  { %v241_v23 = vmul.f32 %v2516_v20, %v2500_v51  ;;  %2519 = vrcp.f32 %v355_v26 }
 0x4a8   :  { %v242_v27 = vpack.c.bf16 %v241_v23, %v240_v22  ;;  %v476_v46 = vpop.xlane.xlu1 %475 }
 0x4aa   :  { %2249 = vmatmul.mubr.msk.bf16.vlgmr.msra.gmra.mrb[4].mxu0 %vm219_vm3, %v242_v27  ;;  %v479_v28 = vpop.xlane.xlu0 %478 }
 0x4ab   :  { %2260 = vmatprep.mubr.msk.bf16.mxu0 %vm2612_vm1, %v2611_v15  ;;  %2521 = vrcp.f32 %v479_v28 }
 0x4ac   :  { %2523 = vrcp.f32 %v476_v46 }
 0x4af   :  { %v2518_v29 = vpop.eup %2517 }
 0x4b0   :  { %v2520_v32 = vpop.eup %2519  ;;  %v362_v33 = vmul.f32 %v2518_v29, %v2504_v1  ;;  %v597_v34 = vpop.xlane.xlu1 %596 }
 0x4b1   :  { %v361_v35 = vmul.f32 %v2520_v32, %v2502_v59  ;;  %v2871_v32 = vld [vmem:[%s3175_s9] sm:$0x3f] }
 0x4b2   :  { %v600_v31 = vpop.xlane.xlu0 %599 }
 0x4b3   :  { %2525 = vrcp.f32 %v600_v31  ;;  %v363_v39 = vpack.c.bf16 %v362_v33, %v361_v35  ;;  %v688_v33 = vrot.slane %v2871_v32, %v2731_v25 }
 0x4b4   :  { %2527 = vrcp.f32 %v597_v34  ;;  %v486_v41 = vpop.permute.xlu1 %485 }
 0x4b5   :  { %v2522_v40 = vpop.eup %2521 }
 0x4b6   :  { %v365_v38 = vpop.permute.xlu0 %364  ;;  %v2524_v42 = vpop.eup %2523  ;;  %v483_v43 = vmul.f32 %v2522_v40, %v2508_v9 }
 0x4b7   :  { %2259 = vmatpush3.bf16.msra.mxu0 %v365_v38  ;;  %v482_v44 = vmul.f32 %v2524_v42, %v2506_v7 }
 0x4b8   :  { %2270 = vmatprep.subr.bf16.mxu0 %v2611_v15  ;;  %v607_v48 = vpop.permute.xlu1 %606 }
 0x4b9   :  { %v484_v45 = vpack.c.bf16 %v483_v43, %v482_v44 }
 0x4ba   :  { %2261 = vmatmul.mubr.msk.bf16.vlgmr.msra.gmra.mrb[8].mxu0 %vm219_vm3, %v363_v39 }
 0x4bb   :  { %2271 = vmatpush3.bf16.msra.mxu0 %v486_v41  ;;  %2272 = vmatprep.mubr.msk.bf16.mxu0 %vm2612_vm1, %v2611_v15 }
 0x4bc   :  { %2282 = vmatprep.subr.bf16.mxu0 %v2611_v15 }
 0x4bd   :  { %v2526_v47 = vpop.eup %2525 }
 0x4be   :  { %v2528_v49 = vpop.eup %2527  ;;  %v604_v50 = vmul.f32 %v2526_v47, %v2512_v13 }
 0x4bf   :  { %v603_v51 = vmul.f32 %v2528_v49, %v2510_v11 }
 0x4c1   :  { %v605_v52 = vpack.c.bf16 %v604_v50, %v603_v51 }
 0x4c2   :  { %2273 = vmatmul.mubr.msk.bf16.vlgmr.msra.gmra.mrb[12].mxu0 %vm219_vm3, %v484_v45 }
 0x4c3   :  { %2283 = vmatpush3.bf16.msra.mxu0 %v607_v48  ;;  %2284 = vmatprep.mubr.msk.bf16.mxu0 %vm2612_vm1, %v2611_v15 }
 0x4c4   :  { %2296 = vmatprep.subr.bf16.mxu0 %v2611_v15 }
 0x4ca   :  { %2285 = vmatmul.mubr.msk.bf16.vlgmr.msra.gmra.mrb[16].mxu0 %vm219_vm3, %v605_v52 }
 0x4cb   :  { %2300 = vmatprep.mubr.msk.bf16.mxu0 %vm2612_vm1, %v2611_v15 }
 0x57d   :  { %v283_v53 = vpop.f32.mrb[4].mxu0 }
 0x57e   :  { %v2250_v54 = vpop.f32.mrb[5].mxu0 }
 0x57f   :  { %v286_v55 = vpop.f32.mrb[6].mxu0 }
 0x580   :  { %v2251_v56 = vpop.f32.mrb[7].mxu0 }
 0x581   :  { %v2474_v56 = vld [vmem:[%s3172_s6 + $0x8] sm:$0xff]  }
 0x58d   :  { %v404_v57 = vpop.f32.mrb[8].mxu0 }
 0x58e   :  { %v2262_v59 = vpop.f32.mrb[9].mxu0 }
 0x58f   :  { %v407_v61 = vpop.f32.mrb[10].mxu0 }
 0x590   :  { %v2439_v63 = vpack.i.bf16 %v407_v61, %v404_v57  ;;  %v2263_v0 = vpop.f32.mrb[11].mxu0 }
 0x592   :  { %2440 = vrot.lane.b32.xlu1 %v2439_v63, %s2624_s2 }
 0x595   :  { %v525_v1 = vpop.f32.mrb[12].mxu0 }
 0x596   :  { %v2274_v2 = vpop.f32.mrb[13].mxu0 }
 0x597   :  { %v528_v4 = vpop.f32.mrb[14].mxu0  ;;  %v776_v2 = vrot.slane %v2871_v32, %v2738_v30 }
 0x598   :  { %v2444_v5 = vpack.i.bf16 %v528_v4, %v525_v1  ;;  %v2275_v6 = vpop.f32.mrb[15].mxu0  ;;  %v781_v4 = vsub.s32 2, %v2728_v24 }
 0x59a   :  { %2445 = vrot.lane.b32.xlu0 %v2444_v5, %s3182_s15 }
 0x59d   :  { %v646_v7 = vpop.f32.mrb[16].mxu0 }
 0x59e   :  { %v2286_v8 = vpop.f32.mrb[17].mxu0 }
 0x59f   :  { %v649_v9 = vpop.f32.mrb[18].mxu0  ;;  %v782_v8 = vrot.slane %v2871_v32, %v781_v4 }
 0x5a0   :  { %v2449_v10 = vpack.i.bf16 %v649_v9, %v646_v7  ;;  %v2287_v11 = vpop.f32.mrb[19].mxu0 }
 0x5a2   :  { %2450 = vrot.lane.b32.xlu1 %v2449_v10, %s3181_s16 }
 0x604   :  { %v2441_v12 = vpop.permute.xlu1 %2440 }
 0x605   :  { %v2443_v14 = vunpack.i.h.bf16 %v2441_v12  ;;  %v2442_v16 = vunpack.i.l.bf16 %v2441_v12 }
 0x607   :  { %v678_v20 = vsel %vm171_vm2, %v286_v55, %v2443_v14  ;;  %v677_v22 = vsel %vm171_vm2, %v283_v53, %v2442_v16  ;;  %v2476_v14 = vld [vmem:[%s3174_s8 + $0x8] sm:$0xff]   ;;  %v2477_v16 = vld [vmem:[%s3174_s8 + $0x10] sm:$0xff]  }
 0x60c   :  { %v2446_v13 = vpop.permute.xlu0 %2445 }
 0x60d   :  { %v2448_v17 = vunpack.i.h.bf16 %v2446_v13  ;;  %v2447_v18 = vunpack.i.l.bf16 %v2446_v13  ;;  %v2475_v13 = vld [vmem:[%s3174_s8] sm:$0xff]  }
 0x60f   :  { %v680_v27 = vsel %vm219_vm3, %v678_v20, %v2448_v17  ;;  %v679_v28 = vsel %vm219_vm3, %v677_v22, %v2447_v18  ;;  %v2478_v17 = vld [vmem:[%s3174_s8 + $0x18] sm:$0xff]   ;;  %v2098_v18 = vld [vmem:[%s3173_s7] ss:$0 sm:$0xff] }
 0x614   :  { %v2451_v19 = vpop.permute.xlu1 %2450 }
 0x615   :  { %v2453_v23 = vunpack.i.h.bf16 %v2451_v19  ;;  %v2452_v26 = vunpack.i.l.bf16 %v2451_v19 }
 0x617   :  { %v683_v46 = vsel %vm681_vm4, %v680_v27, %v2453_v23  ;;  %v682_v29 = vsel %vm681_vm4, %v679_v28, %v2452_v26 }
 0x618   :  { %v684_v31 = vpack.c.bf16 %v683_v46, %v682_v29 }
 0x61a   :  { %2293 = vmatmul.mubr.msk.bf16.vlgmr.msra.gmra.mrb[16].mxu1 %vm52_vm0, %v684_v31 }
 0x61b   :  { %2312 = vmatprep.mubr.msk.bf16.mxu1 %vm2612_vm1, %v2611_v15  ;;  %2305 = vmatpush3.bf16.msra.mxu1 %v2475_v13 }
 0x61c   :  { %2306 = vmatprep.subr.bf16.mxu1 %v2611_v15 }
 0x61f   :  { %2307 = vmatpush3.bf16.msra.mxu1 %v2476_v14 }
 0x620   :  { %2308 = vmatprep.subr.bf16.mxu1 %v2611_v15 }
 0x623   :  { %2309 = vmatpush3.bf16.msra.mxu1 %v2477_v16 }
 0x624   :  { %2310 = vmatprep.subr.bf16.mxu1 %v2611_v15 }
 0x627   :  { %2311 = vmatpush3.bf16.msra.mxu1 %v2478_v17 }
 0x628   :  { %2330 = vmatprep.subr.bf16.mxu1 %v2611_v15 }
 0x6ed   :  { %v738_v34 = vpop.f32.mrb[16].mxu1 }
 0x6ee   :  { %v739_v35 = vadd.f32 %v738_v34, %v688_v33  ;;  %v2294_v38 = vpop.f32.mrb[17].mxu1 }
 0x6ef   :  { %v741_v39 = vpop.f32.mrb[18].mxu1 }
 0x6f0   :  { %v742_v40 = vadd.f32 %v741_v39, %v688_v33  ;;  %v2295_v41 = vpop.f32.mrb[19].mxu1  ;;  %v745_v42 = vadd.f32 %v739_v35, %v2741_v36 }
 0x6f2   :  { %v747_v43 = vsel %vm52_vm0, %v745_v42, 0.0  ;;  %v746_v44 = vadd.f32 %v742_v40, %v2743_v37  ;;  %v2473_v37 = vld [vmem:[%s3172_s6] sm:$0xff]  }
 0x6f3   :  { %748 = vadd.xlane.f32.xlu0 %v747_v43  ;;  %2297 = vmatpush3.bf16.msra.mxu0 %v2473_v37 }
 0x6f4   :  { %v750_v45 = vsel %vm52_vm0, %v746_v44, 0.0  ;;  %2298 = vmatprep.subr.bf16.mxu0 %v2611_v15 }
 0x6f5   :  { %751 = vadd.xlane.f32.xlu1 %v750_v45 }
 0x6f7   :  { %2299 = vmatpush3.bf16.msra.mxu0 %v2474_v56 }
 0x6f8   :  { %2316 = vmatprep.subr.bf16.mxu0 %v2611_v15 }
 0x780   :  { %v749_v47 = vpop.xlane.xlu0 %748 }
 0x781   :  { %v753_v48 = vmul.f32 0.03125, %v749_v47 }
 0x782   :  { %v752_v49 = vpop.xlane.xlu1 %751 }
 0x783   :  { %v755_v50 = vsub.f32 %v745_v42, %v753_v48  ;;  %v754_v51 = vmul.f32 0.03125, %v752_v49  ;;  %v874_v42 = vsub.s32 3, %v2728_v24 }
 0x785   :  { %v756_v52 = vsub.f32 %v746_v44, %v754_v51  ;;  %v757_v53 = vmul.f32 %v755_v50, %v755_v50  ;;  %v875_v43 = vrot.slane %v2871_v32, %v874_v42 }
 0x787   :  { %v759_v54 = vsel %vm52_vm0, %v757_v53, 0.0  ;;  %v758_v55 = vmul.f32 %v756_v52, %v756_v52 }
 0x788   :  { %760 = vadd.xlane.f32.xlu0 %v759_v54 }
 0x789   :  { %v762_v36 = vsel %vm52_vm0, %v758_v55, 0.0 }
 0x78c   :  { %763 = vadd.xlane.f32.xlu0 %v762_v36 }
 0x815   :  { %v761_v57 = vpop.xlane.xlu0 %760 }
 0x816   :  { %v765_v59 = vmul.f32 0.03125, %v761_v57 }
 0x818   :  { %v767_v61 = vadd.f32 1e-12, %v765_v59 }
 0x819   :  { %v764_v62 = vpop.xlane.xlu0 %763 }
 0x81a   :  { %2529 = vrsqrt.f32 %v767_v61  ;;  %v766_v63 = vmul.f32 0.03125, %v764_v62 }
 0x81c   :  { %v768_v0 = vadd.f32 1e-12, %v766_v63 }
 0x81e   :  { %2531 = vrsqrt.f32 %v768_v0 }
 0x824   :  { %v2530_v1 = vpop.eup %2529 }
 0x825   :  { %v771_v3 = vmul.f32 %v2530_v1, %v755_v50  ;;  %v2479_v1 = vld [vmem:[%s3169_s3 + $0x10] sm:$0xff]  }
 0x827   :  { %v777_v6 = vmul.f32 %v776_v2, %v771_v3 }
 0x828   :  { %v2532_v5 = vpop.eup %2531 }
 0x829   :  { %v772_v7 = vmul.f32 %v2532_v5, %v756_v52  ;;  %v783_v10 = vadd.f32 %v782_v8, %v777_v6 }
 0x82b   :  { %v778_v9 = vmul.f32 %v776_v2, %v772_v7  ;;  %v2480_v2 = vld [vmem:[%s3169_s3 + $0x18] sm:$0xff]  }
 0x82d   :  { %v784_v11 = vadd.f32 %v782_v8, %v778_v9 }
 0x82f   :  { %v785_v12 = vpack.c.bf16 %v784_v11, %v783_v10 }
 0x831   :  { %2301 = vmatmul.mubr.msk.bf16.vlgmr.msra.gmra.mrb[20].mxu0 %vm52_vm0, %v785_v12  ;;  %v981_v12 = vsub.s32 5, %v2728_v24 }
 0x832   :  { %2320 = vmatprep.mubr.msk.bf16.mxu0 %vm2612_vm1, %v2611_v15  ;;  %2317 = vmatpush3.bf16.msra.mxu0 %v2479_v1 }
 0x833   :  { %2318 = vmatprep.subr.bf16.mxu0 %v2611_v15 }
 0x836   :  { %2319 = vmatpush3.bf16.msra.mxu0 %v2480_v2 }
 0x837   :  { %2324 = vmatprep.subr.bf16.mxu0 %v2611_v15 }
 0x904   :  { %v846_v19 = vpop.f32.mrb[20].mxu0 }
 0x905   :  { %v847_v20 = vadd.f32 %v2098_v18, %v846_v19  ;;  %v2302_v22 = vpop.f32.mrb[21].mxu0  ;;  %v982_v19 = vrot.slane %v2871_v32, %v981_v12 }
 0x906   :  { %v849_v23 = vpop.f32.mrb[22].mxu0 }
 0x907   :  { %v855_v26 = vmul.f32 0.70710677, %v847_v20  ;;  %v850_v27 = vadd.f32 %v2098_v18, %v849_v23  ;;  %v2303_v28 = vpop.f32.mrb[23].mxu0  ;;  %v853_v34 = vmul.f32 0.5, %v847_v20 }
 0x909   :  { %2533 = verf.f32 %v855_v26  ;;  %v856_v46 = vmul.f32 0.70710677, %v850_v27  ;;  %v854_v35 = vmul.f32 0.5, %v850_v27  ;;  %v2117_v27 = vld [vmem:[%s3170_s4 + $0x1] ss:$0 sm:$0xff] }
 0x90b   :  { %2535 = verf.f32 %v856_v46 }
 0x913   :  { %v2534_v29 = vpop.eup %2533 }
 0x914   :  { %v859_v31 = vadd.f32 1.0, %v2534_v29 }
 0x915   :  { %v2536_v33 = vpop.eup %2535 }
 0x916   :  { %v860_v38 = vadd.f32 1.0, %v2536_v33  ;;  %v861_v39 = vmul.f32 %v859_v31, %v853_v34 }
 0x918   :  { %v862_v40 = vmul.f32 %v860_v38, %v854_v35 }
 0x91a   :  { %v863_v41 = vpack.c.bf16 %v862_v40, %v861_v39 }
 0x91c   :  { %2313 = vmatmul.mubr.msk.bf16.vlgmr.msra.gmra.mrb[20].mxu1 %vm900_vm5, %v863_v41 }
 0x91d   :  { %2332 = vmatprep.mubr.msk.bf16.mxu1 %vm2612_vm1, %v2611_v15 }
 0x9ef   :  { %v938_v44 = vpop.f32.mrb[20].mxu1 }
 0x9f0   :  { %v939_v45 = vadd.f32 %v938_v44, %v875_v43  ;;  %v2314_v47 = vpop.f32.mrb[21].mxu1 }
 0x9f1   :  { %v941_v48 = vpop.f32.mrb[22].mxu1 }
 0x9f2   :  { %v942_v49 = vadd.f32 %v941_v48, %v875_v43  ;;  %v2315_v50 = vpop.f32.mrb[23].mxu1  ;;  %v945_v51 = vadd.f32 %v939_v45, %v783_v10  ;;  %v975_v10 = vsub.s32 4, %v2728_v24 }
 0x9f4   :  { %v947_v52 = vsel %vm52_vm0, %v945_v51, 0.0  ;;  %v946_v53 = vadd.f32 %v942_v49, %v784_v11  ;;  %v976_v11 = vrot.slane %v2871_v32, %v975_v10 }
 0x9f5   :  { %948 = vadd.xlane.f32.xlu0 %v947_v52 }
 0x9f6   :  { %v950_v54 = vsel %vm52_vm0, %v946_v53, 0.0 }
 0x9f7   :  { %951 = vadd.xlane.f32.xlu1 %v950_v54 }
 0xa82   :  { %v949_v55 = vpop.xlane.xlu0 %948 }
 0xa83   :  { %v953_v36 = vmul.f32 0.03125, %v949_v55 }
 0xa84   :  { %v952_v37 = vpop.xlane.xlu1 %951 }
 0xa85   :  { %v955_v56 = vsub.f32 %v945_v51, %v953_v36  ;;  %v954_v57 = vmul.f32 0.03125, %v952_v37 }
 0xa87   :  { %v956_v59 = vsub.f32 %v946_v53, %v954_v57  ;;  %v957_v61 = vmul.f32 %v955_v56, %v955_v56 }
 0xa89   :  { %v959_v62 = vsel %vm52_vm0, %v957_v61, 0.0  ;;  %v958_v63 = vmul.f32 %v956_v59, %v956_v59 }
 0xa8a   :  { %960 = vadd.xlane.f32.xlu0 %v959_v62 }
 0xa8b   :  { %v962_v0 = vsel %vm52_vm0, %v958_v63, 0.0 }
 0xa8c   :  { %963 = vadd.xlane.f32.xlu1 %v962_v0 }
 0xb17   :  { %v961_v3 = vpop.xlane.xlu0 %960 }
 0xb18   :  { %v965_v5 = vmul.f32 0.03125, %v961_v3 }
 0xb19   :  { %v964_v6 = vpop.xlane.xlu1 %963 }
 0xb1a   :  { %v967_v7 = vadd.f32 1e-12, %v965_v5  ;;  %v966_v8 = vmul.f32 0.03125, %v964_v6 }
 0xb1c   :  { %2537 = vrsqrt.f32 %v967_v7  ;;  %v968_v9 = vadd.f32 1e-12, %v966_v8 }
 0xb1e   :  { %2539 = vrsqrt.f32 %v968_v9 }
 0xb26   :  { %v2538_v13 = vpop.eup %2537 }
 0xb27   :  { %v971_v14 = vmul.f32 %v2538_v13, %v955_v56 }
 0xb28   :  { %v2540_v16 = vpop.eup %2539 }
 0xb29   :  { %v977_v17 = vmul.f32 %v976_v11, %v971_v14  ;;  %v972_v18 = vmul.f32 %v2540_v16, %v956_v59 }
 0xb2b   :  { %v978_v20 = vmul.f32 %v976_v11, %v972_v18  ;;  %v2944_v22 = vadd.f32 %v982_v19, %v977_v17 }
 0xb2d   :  { %v2946_v23 = vadd.f32 %v982_v19, %v978_v20 }
 0xb2f   :  { %v999_v26 = vpack.c.bf16 %v2946_v23, %v2944_v22 }
 0xb31   :  { %2321 = vmatmul.mubr.msk.bf16.vlgmr.msra.gmra.mrb[24].mxu0 %vm52_vm0, %v999_v26 }
 0xb32   :  { %2326 = vmatprep.mubr.msk.bf16.mxu0 %vm2612_vm1, %v2611_v15 }
 0xc04   :  { %v1055_v28 = vpop.f32.mrb[24].mxu0 }
 0xc05   :  { %v2322_v46 = vpop.f32.mrb[25].mxu0  ;;  %v1056_v29 = vadd.f32 %v2117_v27, %v1055_v28 }
 0xc06   :  { %v1058_v32 = vpop.f32.mrb[26].mxu0 }
 0xc07   :  { %v1059_v31 = vadd.f32 %v2117_v27, %v1058_v32  ;;  %v2323_v33 = vpop.f32.mrb[27].mxu0 }
 0xc09   :  { %v2956_v34 = vpack.c.bf16 %v1059_v31, %v1056_v29 }
 0xc0b   :  { %1185 = vrot.lane.b32.xlu1 %v2956_v34, %s2613_s23  ;;  %1064 = vrot.lane.b32.xlu0 %v2956_v34, %s2614_s24 }
 0xc0f   :  { %1183 = vrot.lane.b32.xlu1 %v2956_v34, %s2615_s25  ;;  %1304 = vrot.lane.b32.xlu0 %v2956_v34, %s2616_s26  ;;  %s3183_s26 = smov 16  }
 0xc13   :  { %1306 = vrot.lane.b32.xlu1 %v2956_v34, %s2617_s27  ;;  %1425 = vrot.lane.b32.xlu0 %v2956_v34, %s2618_s28  ;;  %s3184_s27 = smov 24  }
 0xc17   :  { %1427 = vrot.lane.b32.xlu1 %v2956_v34, %s2619_s29 }
 0xc7d   :  { %v1065_v35 = vpop.permute.xlu0 %1064  ;;  %v1186_v39 = vpop.permute.xlu1 %1185 }
 0xc7e   :  { %v1070_v38 = vsel %vm171_vm2, %v1065_v35, 0  ;;  %v1191_v41 = vsel %vm171_vm2, %v1186_v39, 0 }
 0xc7f   :  { %2325 = vmatpush3.bf16.xpose.msra.mxu0 %v1070_v38 }
 0xc80   :  { %2336 = vmatprep.subr.bf16.mxu0 %v2611_v15 }
 0xc81   :  { %v1184_v40 = vpop.permute.xlu1 %1183  ;;  %v1305_v47 = vpop.permute.xlu0 %1304 }
 0xc85   :  { %v1307_v43 = vpop.permute.xlu1 %1306  ;;  %v1426_v49 = vpop.permute.xlu0 %1425 }
 0xc86   :  { %2327 = vmatmul.mubr.msk.bf16.vlgmr.msra.gmra.mrb[28].mxu0 %vm171_vm2, %v2956_v34  ;;  %v1312_v44 = vsel %vm171_vm2, %v1307_v43, 0 }
 0xc87   :  { %2337 = vmatpush3.bf16.xpose.msra.mxu0 %v1191_v41  ;;  %2338 = vmatprep.mubr.msk.bf16.mxu0 %vm2612_vm1, %v2611_v15 }
 0xc88   :  { %2348 = vmatprep.subr.bf16.mxu0 %v2611_v15 }
 0xc89   :  { %v1428_v45 = vpop.permute.xlu1 %1427 }
 0xc8a   :  { %v1433_v48 = vsel %vm171_vm2, %v1428_v45, 0 }
 0xc8e   :  { %2339 = vmatmul.mubr.msk.bf16.vlgmr.msra.gmra.mrb[32].mxu0 %vm171_vm2, %v1184_v40 }
 0xc8f   :  { %2349 = vmatpush3.bf16.xpose.msra.mxu0 %v1312_v44  ;;  %2350 = vmatprep.mubr.msk.bf16.mxu0 %vm2612_vm1, %v2611_v15 }
 0xc90   :  { %2360 = vmatprep.subr.bf16.mxu0 %v2611_v15 }
 0xc96   :  { %2351 = vmatmul.mubr.msk.bf16.vlgmr.msra.gmra.mrb[36].mxu0 %vm171_vm2, %v1305_v47 }
 0xc97   :  { %2361 = vmatpush3.bf16.xpose.msra.mxu0 %v1433_v48  ;;  %2362 = vmatprep.mubr.msk.bf16.mxu0 %vm2612_vm1, %v2611_v15 }
 0xc98   :  { %2372 = vmatprep.subr.bf16.mxu0 %v2611_v15 }
 0xc9e   :  { %2363 = vmatmul.mubr.msk.bf16.vlgmr.msra.gmra.mrb[40].mxu0 %vm171_vm2, %v1426_v49 }
 0xc9f   :  { %2376 = vmatprep.mubr.msk.bf16.mxu0 %vm2612_vm1, %v2611_v15 }
 0xd59   :  { %v1106_v50 = vpop.f32.mrb[28].mxu0 }
 0xd5a   :  { %v1107_v51 = vadd.f32 %v1106_v50, %v2793_v58  ;;  %v2328_v52 = vpop.f32.mrb[29].mxu0 }
 0xd5b   :  { %v1109_v53 = vpop.f32.mrb[30].mxu0 }
 0xd5c   :  { %v1110_v54 = vadd.f32 %v1109_v53, %v2798_v60  ;;  %v2329_v55 = vpop.f32.mrb[31].mxu0  ;;  %v1113_v36 = vsel %vm219_vm3, %v1107_v51, -inf }
 0xd5d   :  { %1114 = vmax.xlane.f32.xlu1 %v1113_v36 }
 0xd5e   :  { %v1116_v37 = vsel %vm219_vm3, %v1110_v54, -inf }
 0xd5f   :  { %1117 = vmax.xlane.f32.xlu0 %v1116_v37 }
 0xd61   :  { %v1227_v56 = vpop.f32.mrb[32].mxu0 }
 0xd62   :  { %v1228_v57 = vadd.f32 %v1227_v56, %v2793_v58  ;;  %v2340_v59 = vpop.f32.mrb[33].mxu0 }
 0xd63   :  { %v1230_v61 = vpop.f32.mrb[34].mxu0 }
 0xd64   :  { %v1231_v62 = vadd.f32 %v1230_v61, %v2798_v60  ;;  %v2341_v63 = vpop.f32.mrb[35].mxu0  ;;  %v1234_v0 = vsel %vm219_vm3, %v1228_v57, -inf }
 0xd65   :  { %1235 = vmax.xlane.f32.xlu0 %v1234_v0 }
 0xd66   :  { %v1237_v1 = vsel %vm219_vm3, %v1231_v62, -inf }
 0xd69   :  { %1238 = vmax.xlane.f32.xlu0 %v1237_v1  ;;  %v1348_v2 = vpop.f32.mrb[36].mxu0 }
 0xd6a   :  { %v1349_v3 = vadd.f32 %v1348_v2, %v2793_v58  ;;  %v2352_v5 = vpop.f32.mrb[37].mxu0 }
 0xd6b   :  { %v1351_v6 = vpop.f32.mrb[38].mxu0 }
 0xd6c   :  { %v1352_v7 = vadd.f32 %v1351_v6, %v2798_v60  ;;  %v2353_v8 = vpop.f32.mrb[39].mxu0  ;;  %v1355_v9 = vsel %vm219_vm3, %v1349_v3, -inf }
 0xd6d   :  { %1356 = vmax.xlane.f32.xlu1 %v1355_v9 }
 0xd6e   :  { %v1358_v11 = vsel %vm219_vm3, %v1352_v7, -inf }
 0xd6f   :  { %1359 = vmax.xlane.f32.xlu0 %v1358_v11 }
 0xd71   :  { %v1469_v13 = vpop.f32.mrb[40].mxu0 }
 0xd72   :  { %v1470_v14 = vadd.f32 %v1469_v13, %v2793_v58  ;;  %v2364_v16 = vpop.f32.mrb[41].mxu0 }
 0xd73   :  { %v1472_v17 = vpop.f32.mrb[42].mxu0 }
 0xd74   :  { %v1473_v18 = vadd.f32 %v1472_v17, %v2798_v60  ;;  %v2365_v19 = vpop.f32.mrb[43].mxu0  ;;  %v1476_v20 = vsel %vm219_vm3, %v1470_v14, -inf }
 0xd75   :  { %1477 = vmax.xlane.f32.xlu1 %v1476_v20 }
 0xd76   :  { %v1479_v26 = vsel %vm219_vm3, %v1473_v18, -inf }
 0xd77   :  { %1480 = vmax.xlane.f32.xlu0 %v1479_v26 }
 0xd86   :  { %1136 = vrot.lane.b32.xlu1 %v2956_v34, %s2620_s1 }
 0xdea   :  { %v1115_v27 = vpop.xlane.xlu1 %1114 }
 0xdeb   :  { %v1119_v28 = vsub.f32 %v1107_v51, %v1115_v27 }
 0xdec   :  { %v1118_v46 = vpop.xlane.xlu0 %1117 }
 0xded   :  { %v1121_v32 = vmul.f32 1.442695, %v1119_v28  ;;  %v1120_v29 = vsub.f32 %v1110_v54, %v1118_v46 }
 0xdef   :  { %2541 = vpow2.f32 %v1121_v32  ;;  %v1123_v58 = vmul.f32 1.442695, %v1120_v29 }
 0xdf1   :  { %2543 = vpow2.f32 %v1123_v58 }
 0xdf2   :  { %v1236_v31 = vpop.xlane.xlu0 %1235 }
 0xdf3   :  { %v1240_v60 = vsub.f32 %v1228_v57, %v1236_v31 }
 0xdf5   :  { %v1242_v33 = vmul.f32 1.442695, %v1240_v60 }
 0xdf6   :  { %v1239_v35 = vpop.xlane.xlu0 %1238 }
 0xdf7   :  { %2545 = vpow2.f32 %v1242_v33  ;;  %v1241_v38 = vsub.f32 %v1231_v62, %v1239_v35 }
 0xdf9   :  { %v2542_v39 = vpop.eup %2541  ;;  %v1244_v40 = vmul.f32 1.442695, %v1241_v38 }
 0xdfa   :  { %v1357_v41 = vpop.xlane.xlu1 %1356  ;;  %v1125_v43 = vsel %vm219_vm3, %v2542_v39, 0.0 }
 0xdfb   :  { %v2544_v44 = vpop.eup %2543  ;;  %2547 = vpow2.f32 %v1244_v40  ;;  %v1361_v45 = vsub.f32 %v1349_v3, %v1357_v41  ;;  %1126 = vadd.xlane.f32.xlu1 %v1125_v43 }
 0xdfc   :  { %v1360_v47 = vpop.xlane.xlu0 %1359  ;;  %v1128_v48 = vsel %vm219_vm3, %v2544_v44, 0.0 }
 0xdfd   :  { %v1363_v49 = vmul.f32 1.442695, %v1361_v45  ;;  %v1362_v50 = vsub.f32 %v1352_v7, %v1360_v47  ;;  %1129 = vadd.xlane.f32.xlu0 %v1128_v48 }
 0xdff   :  { %2549 = vpow2.f32 %v1363_v49  ;;  %v1365_v51 = vmul.f32 1.442695, %v1362_v50 }
 0xe01   :  { %v2546_v52 = vpop.eup %2545  ;;  %2551 = vpow2.f32 %v1365_v51 }
 0xe02   :  { %v1478_v53 = vpop.xlane.xlu1 %1477  ;;  %v1246_v54 = vsel %vm219_vm3, %v2546_v52, 0.0 }
 0xe03   :  { %v1482_v55 = vsub.f32 %v1470_v14, %v1478_v53  ;;  %1247 = vadd.xlane.f32.xlu1 %v1246_v54 }
 0xe04   :  { %v1481_v36 = vpop.xlane.xlu0 %1480 }
 0xe05   :  { %v2548_v37 = vpop.eup %2547  ;;  %v1484_v56 = vmul.f32 1.442695, %v1482_v55  ;;  %v1483_v57 = vsub.f32 %v1473_v18, %v1481_v36  ;;  %v2481_v36 = vld [vmem:[%s3171_s5 + $0x10] sm:$0xff]  }
 0xe06   :  { %v1137_v59 = vpop.permute.xlu1 %1136  ;;  %v1249_v61 = vsel %vm219_vm3, %v2548_v37, 0.0  ;;  %2373 = vmatpush3.bf16.msra.mxu0 %v2481_v36 }
 0xe07   :  { %2553 = vpow2.f32 %v1484_v56  ;;  %v1486_v62 = vmul.f32 1.442695, %v1483_v57  ;;  %2331 = vmatpush3.bf16.msra.mxu1 %v1137_v59  ;;  %1250 = vadd.xlane.f32.xlu0 %v1249_v61  ;;  %v2482_v61 = vld [vmem:[%s3171_s5 + $0x18] sm:$0xff]  }
 0xe08   :  { %2342 = vmatprep.subr.bf16.mxu1 %v2611_v15  ;;  %2374 = vmatprep.subr.bf16.mxu0 %v2611_v15 }
 0xe09   :  { %v2550_v63 = vpop.eup %2549  ;;  %2555 = vpow2.f32 %v1486_v62 }
 0xe0a   :  { %v1367_v0 = vsel %vm219_vm3, %v2550_v63, 0.0  ;;  %2375 = vmatpush3.bf16.msra.mxu0 %v2482_v61 }
 0xe0b   :  { %v2552_v1 = vpop.eup %2551  ;;  %1368 = vadd.xlane.f32.xlu1 %v1367_v0  ;;  %2388 = vmatprep.subr.bf16.mxu0 %v2611_v15 }
 0xe0c   :  { %v1370_v2 = vsel %vm219_vm3, %v2552_v1, 0.0 }
 0xe0d   :  { %1371 = vadd.xlane.f32.xlu0 %v1370_v2 }
 0xe11   :  { %v2554_v3 = vpop.eup %2553 }
 0xe12   :  { %v1488_v5 = vsel %vm219_vm3, %v2554_v3, 0.0 }
 0xe13   :  { %v2556_v6 = vpop.eup %2555  ;;  %1489 = vadd.xlane.f32.xlu1 %v1488_v5 }
 0xe14   :  { %v1491_v7 = vsel %vm219_vm3, %v2556_v6, 0.0 }
 0xe15   :  { %1492 = vadd.xlane.f32.xlu0 %v1491_v7 }
 0xe24   :  { %1378 = vrot.lane.b32.xlu1 %v2956_v34, %s2621_s17 }
 0xe28   :  { %1499 = vrot.lane.b32.xlu1 %v2956_v34, %s2622_s18 }
 0xe2b   :  { %1257 = vrot.lane.b32.xlu0 %v2956_v34, %s2623_s19 }
 0xe88   :  { %v1127_v8 = vpop.xlane.xlu1 %1126 }
 0xe89   :  { %2557 = vrcp.f32 %v1127_v8 }
 0xe8a   :  { %v1130_v9 = vpop.xlane.xlu0 %1129 }
 0xe8b   :  { %2559 = vrcp.f32 %v1130_v9 }
 0xe90   :  { %v1248_v18 = vpop.xlane.xlu1 %1247 }
 0xe93   :  { %v2558_v11 = vpop.eup %2557 }
 0xe94   :  { %v1251_v13 = vpop.xlane.xlu0 %1250  ;;  %v1133_v16 = vmul.f32 %v2558_v11, %v2542_v39 }
 0xe95   :  { %v2560_v14 = vpop.eup %2559  ;;  %2561 = vrcp.f32 %v1251_v13 }
 0xe96   :  { %v1134_v17 = vmul.f32 %v2560_v14, %v2544_v44  ;;  %2563 = vrcp.f32 %v1248_v18 }
 0xe98   :  { %v1135_v19 = vpack.c.bf16 %v1134_v17, %v1133_v16  ;;  %v1369_v34 = vpop.xlane.xlu1 %1368 }
 0xe9a   :  { %2333 = vmatmul.mubr.msk.bf16.vlgmr.msra.gmra.mrb[24].mxu1 %vm219_vm3, %v1135_v19  ;;  %v1372_v20 = vpop.xlane.xlu0 %1371 }
 0xe9b   :  { %2344 = vmatprep.mubr.msk.bf16.mxu1 %vm2612_vm1, %v2611_v15  ;;  %2565 = vrcp.f32 %v1372_v20 }
 0xe9c   :  { %2567 = vrcp.f32 %v1369_v34 }
 0xe9f   :  { %v2562_v26 = vpop.eup %2561 }
 0xea0   :  { %v2564_v28 = vpop.eup %2563  ;;  %v1255_v46 = vmul.f32 %v2562_v26, %v2548_v37  ;;  %v1490_v32 = vpop.xlane.xlu1 %1489 }
 0xea1   :  { %v1254_v29 = vmul.f32 %v2564_v28, %v2546_v52 }
 0xea2   :  { %v1493_v27 = vpop.xlane.xlu0 %1492 }
 0xea3   :  { %2569 = vrcp.f32 %v1493_v27  ;;  %v1256_v31 = vpack.c.bf16 %v1255_v46, %v1254_v29 }
 0xea4   :  { %2571 = vrcp.f32 %v1490_v32  ;;  %v1379_v33 = vpop.permute.xlu1 %1378  ;;  %v3064_v32 = vld [vmem:[%s3175_s9 + $0x8] sm:$0x3f] }
 0xea5   :  { %v2566_v60 = vpop.eup %2565  ;;  %v1580_v29 = vrot.slane %v3064_v32, %v2731_v25  ;;  %v1668_v61 = vrot.slane %v3064_v32, %v2738_v30  ;;  %v2485_v30 = vld [vmem:[%s3174_s8 + $0x20] sm:$0xff]  }
 0xea6   :  { %v1258_v58 = vpop.permute.xlu0 %1257  ;;  %v2568_v35 = vpop.eup %2567  ;;  %v1376_v38 = vmul.f32 %v2566_v60, %v2552_v1 }
 0xea7   :  { %2343 = vmatpush3.bf16.msra.mxu1 %v1258_v58  ;;  %v1375_v39 = vmul.f32 %v2568_v35, %v2550_v63 }
 0xea8   :  { %2354 = vmatprep.subr.bf16.mxu1 %v2611_v15  ;;  %v1500_v43 = vpop.permute.xlu1 %1499 }
 0xea9   :  { %v1377_v40 = vpack.c.bf16 %v1376_v38, %v1375_v39 }
 0xeaa   :  { %2345 = vmatmul.mubr.msk.bf16.vlgmr.msra.gmra.mrb[28].mxu1 %vm219_vm3, %v1256_v31 }
 0xeab   :  { %2355 = vmatpush3.bf16.msra.mxu1 %v1379_v33  ;;  %2356 = vmatprep.mubr.msk.bf16.mxu1 %vm2612_vm1, %v2611_v15 }
 0xeac   :  { %2366 = vmatprep.subr.bf16.mxu1 %v2611_v15 }
 0xead   :  { %v2570_v41 = vpop.eup %2569 }
 0xeae   :  { %v2572_v44 = vpop.eup %2571  ;;  %v1497_v45 = vmul.f32 %v2570_v41, %v2556_v6 }
 0xeaf   :  { %v1496_v47 = vmul.f32 %v2572_v44, %v2554_v3 }
 0xeb1   :  { %v1498_v48 = vpack.c.bf16 %v1497_v45, %v1496_v47 }
 0xeb2   :  { %2357 = vmatmul.mubr.msk.bf16.vlgmr.msra.gmra.mrb[32].mxu1 %vm219_vm3, %v1377_v40 }
 0xeb3   :  { %2367 = vmatpush3.bf16.msra.mxu1 %v1500_v43  ;;  %2368 = vmatprep.mubr.msk.bf16.mxu1 %vm2612_vm1, %v2611_v15 }
 0xeb4   :  { %2380 = vmatprep.subr.bf16.mxu1 %v2611_v15 }
 0xeba   :  { %2369 = vmatmul.mubr.msk.bf16.vlgmr.msra.gmra.mrb[36].mxu1 %vm219_vm3, %v1498_v48 }
 0xebb   :  { %2384 = vmatprep.mubr.msk.bf16.mxu1 %vm2612_vm1, %v2611_v15 }
 0xf6d   :  { %v1176_v49 = vpop.f32.mrb[24].mxu1 }
 0xf6e   :  { %v2334_v50 = vpop.f32.mrb[25].mxu1 }
 0xf6f   :  { %v1179_v51 = vpop.f32.mrb[26].mxu1 }
 0xf70   :  { %v2335_v52 = vpop.f32.mrb[27].mxu1 }
 0xf7d   :  { %v1297_v53 = vpop.f32.mrb[28].mxu1 }
 0xf7e   :  { %v2346_v54 = vpop.f32.mrb[29].mxu1 }
 0xf7f   :  { %v1300_v55 = vpop.f32.mrb[30].mxu1 }
 0xf80   :  { %v2454_v37 = vpack.i.bf16 %v1300_v55, %v1297_v53  ;;  %v2347_v56 = vpop.f32.mrb[31].mxu1  ;;  %v2484_v53 = vld [vmem:[%s3172_s6 + $0x18] sm:$0xff]  }
 0xf82   :  { %2455 = vrot.lane.b32.xlu1 %v2454_v37, %s2624_s2 }
 0xf85   :  { %v1418_v57 = vpop.f32.mrb[32].mxu1 }
 0xf86   :  { %v2358_v59 = vpop.f32.mrb[33].mxu1 }
 0xf87   :  { %v1421_v62 = vpop.f32.mrb[34].mxu1 }
 0xf88   :  { %v2459_v63 = vpack.i.bf16 %v1421_v62, %v1418_v57  ;;  %v2359_v0 = vpop.f32.mrb[35].mxu1 }
 0xf8a   :  { %2460 = vrot.lane.b32.xlu0 %v2459_v63, %s3183_s26 }
 0xf8d   :  { %v1539_v1 = vpop.f32.mrb[36].mxu1 }
 0xf8e   :  { %v2370_v2 = vpop.f32.mrb[37].mxu1 }
 0xf8f   :  { %v1542_v3 = vpop.f32.mrb[38].mxu1  ;;  %v1674_v2 = vrot.slane %v3064_v32, %v781_v4  ;;  %v2486_v4 = vld [vmem:[%s3174_s8 + $0x28] sm:$0xff]  }
 0xf90   :  { %v2464_v5 = vpack.i.bf16 %v1542_v3, %v1539_v1  ;;  %v2371_v6 = vpop.f32.mrb[39].mxu1 }
 0xf92   :  { %2465 = vrot.lane.b32.xlu1 %v2464_v5, %s3184_s27 }
 0xff4   :  { %v2456_v7 = vpop.permute.xlu1 %2455 }
 0xff5   :  { %v2458_v9 = vunpack.i.h.bf16 %v2456_v7  ;;  %v2457_v11 = vunpack.i.l.bf16 %v2456_v7 }
 0xff7   :  { %v1571_v17 = vsel %vm171_vm2, %v1179_v51, %v2458_v9  ;;  %v1570_v18 = vsel %vm171_vm2, %v1176_v49, %v2457_v11  ;;  %v2488_v9 = vld [vmem:[%s3174_s8 + $0x38] sm:$0xff]   ;;  %v2137_v11 = vld [vmem:[%s3173_s7 + $0x1] ss:$0 sm:$0xff] }
 0xffc   :  { %v2461_v8 = vpop.permute.xlu0 %2460 }
 0xffd   :  { %v2463_v13 = vunpack.i.h.bf16 %v2461_v8  ;;  %v2462_v14 = vunpack.i.l.bf16 %v2461_v8  ;;  %v2487_v8 = vld [vmem:[%s3174_s8 + $0x30] sm:$0xff]  }
 0xfff   :  { %v1573_v34 = vsel %vm219_vm3, %v1571_v17, %v2463_v13  ;;  %v1572_v26 = vsel %vm219_vm3, %v1570_v18, %v2462_v14 }
0x1004   :  { %v2466_v16 = vpop.permute.xlu1 %2465 }
0x1005   :  { %v2468_v19 = vunpack.i.h.bf16 %v2466_v16  ;;  %v2467_v20 = vunpack.i.l.bf16 %v2466_v16 }
0x1007   :  { %v1575_v27 = vsel %vm681_vm4, %v1573_v34, %v2468_v19  ;;  %v1574_v28 = vsel %vm681_vm4, %v1572_v26, %v2467_v20 }
0x1008   :  { %v1576_v46 = vpack.c.bf16 %v1575_v27, %v1574_v28 }
0x100a   :  { %2377 = vmatmul.mubr.msk.bf16.vlgmr.msra.gmra.mrb[44].mxu0 %vm52_vm0, %v1576_v46 }
0x100b   :  { %2396 = vmatprep.mubr.msk.bf16.mxu0 %vm2612_vm1, %v2611_v15  ;;  %2389 = vmatpush3.bf16.msra.mxu0 %v2485_v30 }
0x100c   :  { %2390 = vmatprep.subr.bf16.mxu0 %v2611_v15 }
0x100f   :  { %2391 = vmatpush3.bf16.msra.mxu0 %v2486_v4 }
0x1010   :  { %2392 = vmatprep.subr.bf16.mxu0 %v2611_v15 }
0x1013   :  { %2393 = vmatpush3.bf16.msra.mxu0 %v2487_v8 }
0x1014   :  { %2394 = vmatprep.subr.bf16.mxu0 %v2611_v15 }
0x1017   :  { %2395 = vmatpush3.bf16.msra.mxu0 %v2488_v9 }
0x1018   :  { %2414 = vmatprep.subr.bf16.mxu0 %v2611_v15 }
0x10dd   :  { %v1630_v58 = vpop.f32.mrb[44].mxu0 }
0x10de   :  { %v1631_v31 = vadd.f32 %v1630_v58, %v1580_v29  ;;  %v2378_v60 = vpop.f32.mrb[45].mxu0 }
0x10df   :  { %v1633_v33 = vpop.f32.mrb[46].mxu0 }
0x10e0   :  { %v1634_v35 = vadd.f32 %v1633_v33, %v1580_v29  ;;  %v2379_v38 = vpop.f32.mrb[47].mxu0  ;;  %v1637_v39 = vadd.f32 %v1631_v31, %v2944_v22 }
0x10e2   :  { %v1639_v40 = vsel %vm52_vm0, %v1637_v39, 0.0  ;;  %v1638_v41 = vadd.f32 %v1634_v35, %v2946_v23  ;;  %v2483_v23 = vld [vmem:[%s3172_s6 + $0x10] sm:$0xff]   ;;  %v1770_v35 = vrot.slane %v3064_v32, %v874_v42 }
0x10e3   :  { %1640 = vadd.xlane.f32.xlu0 %v1639_v40  ;;  %2381 = vmatpush3.bf16.msra.mxu1 %v2483_v23 }
0x10e4   :  { %v1642_v43 = vsel %vm52_vm0, %v1638_v41, 0.0  ;;  %2382 = vmatprep.subr.bf16.mxu1 %v2611_v15 }
0x10e5   :  { %1643 = vadd.xlane.f32.xlu1 %v1642_v43 }
0x10e7   :  { %2383 = vmatpush3.bf16.msra.mxu1 %v2484_v53 }
0x10e8   :  { %2400 = vmatprep.subr.bf16.mxu1 %v2611_v15 }
0x1170   :  { %v1641_v44 = vpop.xlane.xlu0 %1640 }
0x1171   :  { %v1645_v45 = vmul.f32 0.03125, %v1641_v44 }
0x1172   :  { %v1644_v47 = vpop.xlane.xlu1 %1643 }
0x1173   :  { %v1647_v25 = vsub.f32 %v1637_v39, %v1645_v45  ;;  %v1646_v48 = vmul.f32 0.03125, %v1644_v47 }
0x1175   :  { %v1648_v49 = vsub.f32 %v1638_v41, %v1646_v48  ;;  %v1649_v50 = vmul.f32 %v1647_v25, %v1647_v25 }
0x1177   :  { %v1651_v51 = vsel %vm52_vm0, %v1649_v50, 0.0  ;;  %v1650_v52 = vmul.f32 %v1648_v49, %v1648_v49 }
0x1178   :  { %1652 = vadd.xlane.f32.xlu0 %v1651_v51 }
0x1179   :  { %v1654_v22 = vsel %vm52_vm0, %v1650_v52, 0.0 }
0x117c   :  { %1655 = vadd.xlane.f32.xlu0 %v1654_v22 }
0x1205   :  { %v1653_v54 = vpop.xlane.xlu0 %1652 }
0x1206   :  { %v1657_v55 = vmul.f32 0.03125, %v1653_v54 }
0x1208   :  { %v1659_v36 = vadd.f32 1e-12, %v1657_v55 }
0x1209   :  { %v1656_v37 = vpop.xlane.xlu0 %1655 }
0x120a   :  { %2573 = vrsqrt.f32 %v1659_v36  ;;  %v1658_v56 = vmul.f32 0.03125, %v1656_v37 }
0x120c   :  { %v1660_v57 = vadd.f32 1e-12, %v1658_v56 }
0x120e   :  { %2575 = vrsqrt.f32 %v1660_v57 }
0x1214   :  { %v2574_v59 = vpop.eup %2573 }
0x1215   :  { %v1663_v62 = vmul.f32 %v2574_v59, %v1647_v25 }
0x1217   :  { %v1669_v0 = vmul.f32 %v1668_v61, %v1663_v62  ;;  %v1870_v62 = vrot.slane %v3064_v32, %v975_v10 }
0x1218   :  { %v2576_v63 = vpop.eup %2575 }
0x1219   :  { %v1664_v1 = vmul.f32 %v2576_v63, %v1648_v49  ;;  %v1675_v5 = vadd.f32 %v1674_v2, %v1669_v0  ;;  %v1880_v0 = vand.u32 127, %v80_v21  ;;  %v2489_v21 = vld [vmem:[%s3176_s10] sm:$0xff]  }
0x121b   :  { %v1670_v3 = vmul.f32 %v1668_v61, %v1664_v1  ;;  %v1883_v1 = vmul.u32 8, %v2728_v24  ;;  %v2490_v24 = vld [vmem:[%s3176_s10 + $0x8] sm:$0xff]  }
0x121d   :  { %v1676_v6 = vadd.f32 %v1674_v2, %v1670_v3  ;;  %vm1884_vm6 = vcmp.eq.s32.totalorder %v1880_v0, %v1883_v1 }
0x121e   :  { %v2154_v9 = vsel %vm1884_vm6, 1.0, %v2611_v15 }
0x121f   :  { %v1677_v7 = vpack.c.bf16 %v1676_v6, %v1675_v5 }
0x1221   :  { %2385 = vmatmul.mubr.msk.bf16.vlgmr.msra.gmra.mrb[40].mxu1 %vm52_vm0, %v1677_v7  ;;  %v1876_v7 = vrot.slane %v3064_v32, %v981_v12 }
0x1222   :  { %2402 = vmatprep.mubr.msk.bf16.mxu1 %vm2612_vm1, %v2611_v15 }
0x12f4   :  { %v1740_v13 = vpop.f32.mrb[40].mxu1 }
0x12f5   :  { %v1741_v14 = vadd.f32 %v2137_v11, %v1740_v13  ;;  %v2386_v16 = vpop.f32.mrb[41].mxu1 }
0x12f6   :  { %v1743_v17 = vpop.f32.mrb[42].mxu1 }
0x12f7   :  { %v1749_v18 = vmul.f32 0.70710677, %v1741_v14  ;;  %v1744_v19 = vadd.f32 %v2137_v11, %v1743_v17  ;;  %v2387_v20 = vpop.f32.mrb[43].mxu1  ;;  %v1747_v46 = vmul.f32 0.5, %v1741_v14  ;;  %v1887_v11 = vpack.c.bf16 %v2154_v9, %v2154_v9  ;;  %v2491_v17 = vld [vmem:[%s3178_s12] sm:$0xff]  }
0x12f9   :  { %2577 = verf.f32 %v1749_v18  ;;  %v1750_v34 = vmul.f32 0.70710677, %v1744_v19  ;;  %v1748_v29 = vmul.f32 0.5, %v1744_v19  ;;  %v2492_v18 = vld [vmem:[%s3178_s12 + $0x8] sm:$0xff]   ;;  %v2156_v19 = vld [vmem:[%s3177_s11] ss:$0 sm:$0xff] }
0x12fa   :  { %s2627_s12 = smov [#allocation2]  }
0x12fb   :  { %2579 = verf.f32 %v1750_v34  ;;  %s2075_s28 = sshll.u32 %s2627_s12, 4  ;;  %s2076_s28 = int_to_ptr.vmem [resolvable:$true] %s2075_s28 }
0x12fc   :  { %s2587_s11 = scalar_lea.vmem %s2076_s28, 32  ;;  %p2592_p1 = scmp.lt.s32.totalorder %s2076_s28, %s2076_s28 }
0x12fd   :  { %p2588_p0 = scmp.ne.s32.totalorder %s2076_s28, %s2587_s11  ;;  %p2593_p2 = scmp.lt.s32.totalorder %s2587_s11, %s2587_s11 }
0x12ff   :  { %p2594_p3 = por %p2593_p2, %p2592_p1 }
0x1301   :  { %p2595_p4 = pnand %p2594_p3, %p2588_p0 }
0x1303   :  { %v2578_v26 = vpop.eup %2577 }
0x1304   :  { %v1753_v27 = vadd.f32 1.0, %v2578_v26 }
0x1305   :  { %v2580_v28 = vpop.eup %2579 }
0x1306   :  { %v1754_v58 = vadd.f32 1.0, %v2580_v28  ;;  %v1755_v31 = vmul.f32 %v1753_v27, %v1747_v46 }
0x1308   :  { %v1756_v60 = vmul.f32 %v1754_v58, %v1748_v29 }
0x130a   :  { %v1757_v33 = vpack.c.bf16 %v1756_v60, %v1755_v31 }
0x130c   :  { %2397 = vmatmul.mubr.msk.bf16.vlgmr.msra.gmra.mrb[48].mxu0 %vm900_vm5, %v1757_v33 }
0x130d   :  { %2418 = vmatprep.mubr.msk.bf16.mxu0 %vm2612_vm1, %v2611_v15  ;;  %2415 = vmatpush3.bf16.msra.mxu0 %v2491_v17 }
0x130e   :  { %2416 = vmatprep.subr.bf16.mxu0 %v2611_v15 }
0x1311   :  { %2417 = vmatpush3.bf16.msra.mxu0 %v2492_v18 }
0x13df   :  { %v1832_v38 = vpop.f32.mrb[48].mxu0 }
0x13e0   :  { %v1833_v39 = vadd.f32 %v1832_v38, %v1770_v35  ;;  %v2398_v40 = vpop.f32.mrb[49].mxu0 }
0x13e1   :  { %v1835_v41 = vpop.f32.mrb[50].mxu0 }
0x13e2   :  { %v1836_v43 = vadd.f32 %v1835_v41, %v1770_v35  ;;  %v2399_v44 = vpop.f32.mrb[51].mxu0  ;;  %v1839_v45 = vadd.f32 %v1833_v39, %v1675_v5 }
0x13e4   :  { %v1841_v47 = vsel %vm52_vm0, %v1839_v45, 0.0  ;;  %v1840_v25 = vadd.f32 %v1836_v43, %v1676_v6 }
0x13e5   :  { %1842 = vadd.xlane.f32.xlu0 %v1841_v47 }
0x13e6   :  { %v1844_v48 = vsel %vm52_vm0, %v1840_v25, 0.0 }
0x13e7   :  { %1845 = vadd.xlane.f32.xlu1 %v1844_v48 }
0x1472   :  { %v1843_v49 = vpop.xlane.xlu0 %1842 }
0x1473   :  { %v1847_v50 = vmul.f32 0.03125, %v1843_v49 }
0x1474   :  { %v1846_v51 = vpop.xlane.xlu1 %1845 }
0x1475   :  { %v1849_v52 = vsub.f32 %v1839_v45, %v1847_v50  ;;  %v1848_v22 = vmul.f32 0.03125, %v1846_v51 }
0x1477   :  { %v1850_v42 = vsub.f32 %v1840_v25, %v1848_v22  ;;  %v1851_v23 = vmul.f32 %v1849_v52, %v1849_v52 }
0x1479   :  { %v1853_v53 = vsel %vm52_vm0, %v1851_v23, 0.0  ;;  %v1852_v54 = vmul.f32 %v1850_v42, %v1850_v42 }
0x147a   :  { %1854 = vadd.xlane.f32.xlu0 %v1853_v53 }
0x147b   :  { %v1856_v55 = vsel %vm52_vm0, %v1852_v54, 0.0 }
0x147c   :  { %1857 = vadd.xlane.f32.xlu1 %v1856_v55 }
0x1507   :  { %v1855_v36 = vpop.xlane.xlu0 %1854 }
0x1508   :  { %v1859_v37 = vmul.f32 0.03125, %v1855_v36 }
0x1509   :  { %v1858_v56 = vpop.xlane.xlu1 %1857 }
0x150a   :  { %v1861_v57 = vadd.f32 1e-12, %v1859_v37  ;;  %v1860_v59 = vmul.f32 0.03125, %v1858_v56 }
0x150c   :  { %2581 = vrsqrt.f32 %v1861_v57  ;;  %v1862_v61 = vadd.f32 1e-12, %v1860_v59 }
0x150e   :  { %2583 = vrsqrt.f32 %v1862_v61 }
0x1516   :  { %v2582_v63 = vpop.eup %2581 }
0x1517   :  { %v1865_v2 = vmul.f32 %v2582_v63, %v1849_v52 }
0x1518   :  { %v2584_v3 = vpop.eup %2583 }
0x1519   :  { %v1866_v5 = vmul.f32 %v2584_v3, %v1850_v42  ;;  %v1871_v6 = vmul.f32 %v1870_v62, %v1865_v2 }
0x151b   :  { %v1872_v30 = vmul.f32 %v1870_v62, %v1866_v5  ;;  %v1877_v4 = vadd.f32 %v1876_v7, %v1871_v6 }
0x151d   :  { %v1878_v8 = vadd.f32 %v1876_v7, %v1872_v30 }
0x151f   :  { %v1888_v10 = vpack.c.bf16 %v1878_v8, %v1877_v4 }
0x1521   :  { %2401 = vmatpush3.bf16.msra.mxu1 %v1888_v10 }
0x1522   :  { %2406 = vmatprep.subr.bf16.mxu1 %v2611_v15 }
0x1524   :  { %2403 = vmatmul.mubr.msk.bf16.vlgmr.msra.gmra.mrb[44].mxu1 %vm219_vm3, %v1887_v11 }
0x1525   :  { %2407 = vmatpush3.bf16.msra.mxu1 %v2489_v21  ;;  %2410 = vmatprep.mubr.msk.bf16.mxu1 %vm2612_vm1, %v2611_v15 }
0x1526   :  { %2408 = vmatprep.subr.bf16.mxu1 %v2611_v15  ;;  %v2160_v15 = vld [vmem:[%s3179_s13] ss:$0 sm:$0xff] }
0x1529   :  { %2409 = vmatpush3.bf16.msra.mxu1 %v2490_v24 }
0x15f7   :  { %v1926_v12 = vpop.f32.mrb[44].mxu1 }
0x15f8   :  { %v1932_v32 = vpack.c.bf16 %v1926_v12, %v1926_v12  ;;  %v2404_v13 = vpop.f32.mrb[45].mxu1 }
0x15f9   :  { %v1929_v14 = vpop.f32.mrb[46].mxu1 }
0x15fa   :  { %v2405_v16 = vpop.f32.mrb[47].mxu1  ;;  %2411 = vmatmul.mubr.msk.bf16.vlgmr.msra.gmra.mrb[48].mxu1 %vm52_vm0, %v1932_v32 }
0x16cd   :  { %v1993_v20 = vpop.f32.mrb[48].mxu1 }
0x16ce   :  { %v1994_v34 = vadd.f32 %v2156_v19, %v1993_v20  ;;  %v2412_v26 = vpop.f32.mrb[49].mxu1 }
0x16cf   :  { %v1996_v27 = vpop.f32.mrb[50].mxu1 }
0x16d0   :  { %2585 = vtanh.f32 %v1994_v34  ;;  %v2413_v28 = vpop.f32.mrb[51].mxu1 }
0x16da   :  { %v2586_v46 = vpop.eup %2585 }
0x16db   :  { %v2000_v29 = vpack.c.bf16 %v2586_v46, %v2586_v46 }
0x16dd   :  { %2419 = vmatmul.mubr.msk.bf16.vlgmr.msra.gmra.mrb[52].mxu0 %vm52_vm0, %v2000_v29 }
0x17b0   :  { %v2061_v58 = vpop.f32.mrb[52].mxu0 }
0x17b1   :  { %v2062_v31 = vadd.f32 %v2160_v15, %v2061_v58  ;;  %v2420_v60 = vpop.f32.mrb[53].mxu0 }
0x17b2   :  { %v2064_v33 = vpop.f32.mrb[54].mxu0 }
0x17b3   :  { %v2421_v35 = vpop.f32.mrb[55].mxu0  ;;  %2068 = vst.msk [vmem:[#allocation2] sm:$0x3] %vm2067_vm7, %v2062_v31 }
0x17b4   :  { %2598 = shalt.err (!%p2595_p4)
}
0x17b5   :  { %s2599_s13 = scalar_lea.hbm %s3180_s14, 32 }
0x17b6   :  { %p2600_p5 = scmp.ne.s32.totalorder %s3180_s14, %s2599_s13  ;;  %p2603_p6 = scmp.lt.u32.totalorder %s2599_s13, %s3180_s14 }
0x17b8   :  { %p2605_p7 = pnand %p2603_p6, %p2600_p5 }
0x17ba   :  { %2608 = shalt.err (!%p2605_p7)
}
0x17bb   :  { %2078 = dma.vmem_to_hbm [thread:$0]  %s2076_s28, 32, %s3180_s14, [#allocation3]  }
0x17bc   :  { %2609 = dma.done.wait [#allocation3], 32  }
0x17bd   :  { %2610 = vsyncadd [#allocation3], 4294967264 }
0x17be   :  { %2082 = vsyncpa [#allocation3], 1 }

</bundles_post_ra>
